<compile_context>
chip_gen: v5e
topology: v5e:2x2
jax: 0.10.0
libtpu: 0.0.40
codegen_flags: <defaults>
</compile_context>

<pallas_src>
import functools

import jax
import jax.numpy as jnp
from jax.experimental import pallas as pl
from jax.experimental.pallas import tpu as pltpu

LANE = 128  # TPU lane width; output channels padded to a multiple of this.


def _round_up(x, m):
    return ((x + m - 1) // m) * m


def _vmem_limit_bytes():
    """Per-generation scoped-VMEM cap: ~7/8 of physical VMEM, clipped to 100 MiB."""
    try:
        cap = int(pltpu.get_tpu_info().vmem_capacity_bytes)
    except Exception:  # older JAX / no device info -> conservative default
        cap = 64 * 1024 * 1024
    return int(min(cap * 7 // 8, 100 * 1024 * 1024))


# ----------------------------- Pallas kernel --------------------------------

def _resnet_block_kernel(p1_ref, w1cat_ref, b1_ref, w2_ref, bc_ref, o_ref,
                         y1pad_ref, *, Ho, Wo, Cp):
    """One image per grid step: full ResNet block, y1 never leaves the chip."""
    M = Ho * Wo

    # conv1 (3x3, BN1 folded) and the 1x1 projection (BN_proj folded) share ONE MXU
    # matmul: columns [0, Cp) -> y1 pre-activation, columns [Cp, 2*Cp) -> residual.
    acc1 = jnp.dot(p1_ref[0], w1cat_ref[...],
                   preferred_element_type=jnp.float32)            # (M, 2*Cp) f32
    y1 = jnp.maximum(acc1[:, :Cp] + b1_ref[...], 0.0)             # BN1 bias + ReLU
    res = acc1[:, Cp:]                                            # projection (pre-bias)

    # conv2 (3x3 / stride 1 / pad 1) as ONE matmul via an on-chip zero-padded im2col:
    # no per-tap rolls, edge masks, casts or serial f32 adds, no MRF drains per tap.
    # The scratch is re-zeroed every step: the grid may be sharded across TensorCores,
    # so a program_id()==0 one-time init would not run on every core.
    y1pad_ref[...] = jnp.zeros_like(y1pad_ref)
    y1pad_ref[1:Ho + 1, 1:Wo + 1, :] = y1.reshape(Ho, Wo, Cp)
    taps = [y1pad_ref[dy:dy + Ho, dx:dx + Wo, :]                  # (Ho, Wo, Cp) each
            for dy in range(3) for dx in range(3)]
    patches2 = jnp.concatenate(taps, axis=-1).reshape(M, 9 * Cp)  # lane-aligned concat
    # TODO(synk): a bf16 y1 scratch would cut this single pre-dot cast another 9x; kept
    #             f32 so the (Ho, Wo) -> (M,) collapse stays a layout-trivial reshape.
    acc2 = jnp.dot(patches2.astype(jnp.bfloat16), w2_ref[...],
                   preferred_element_type=jnp.float32)            # (M, Cp) f32

    # residual add, combined (bn2 + bn_proj) bias, final ReLU.
    o_ref[0] = jnp.maximum(acc2 + res + bc_ref[...], 0.0).astype(o_ref.dtype)


# ------------------------------- JAX glue ------------------------------------

def _im2col_3x3(x_nhwc, stride):
    """3x3 / pad-1 patch extraction -> (N, Ho*Wo, 9*C).  Wrapper-side glue for conv1
    only; x is already bf16 so the 9x-expanded tensor through HBM is half-size."""
    N, H, W, C = x_nhwc.shape
    xp = jnp.pad(x_nhwc, ((0, 0), (1, 1), (1, 1), (0, 0)))
    Ho = (H + 2 - 3) // stride + 1
    Wo = (W + 2 - 3) // stride + 1
    cols = []
    for ky in range(3):
        for kx in range(3):
            cols.append(xp[:, ky:ky + (Ho - 1) * stride + 1:stride,
                           kx:kx + (Wo - 1) * stride + 1:stride, :])
    patches = jnp.concatenate(cols, axis=-1)                      # (N, Ho, Wo, 9*C)
    return patches.reshape(N, Ho * Wo, 9 * C), Ho, Wo


def _block_call(p1, w1cat, b1p, w2p, bcp, *, N, M, K1, Cp, Ho, Wo,
                single_buffer_consts):
    def const_spec(shape):
        # Constant-index operands never change block index, so a single VMEM buffer
        # suffices (halves their footprint vs. default double-buffering).
        if single_buffer_consts:
            return pl.BlockSpec(shape, lambda n: (0, 0), pipeline_mode=pl.Buffered(1))
        return pl.BlockSpec(shape, lambda n: (0, 0))

    kernel = functools.partial(_resnet_block_kernel, Ho=Ho, Wo=Wo, Cp=Cp)
    flops = 2 * N * M * (K1 * 2 * Cp + 9 * Cp * Cp)
    bytes_accessed = int(p1.size * 2 + w1cat.size * 2 + w2p.size * 2
                         + (b1p.size + bcp.size) * 4 + N * M * Cp * 4)

    # (Output stays f32 to match the PyTorch module; a bf16 out dtype would halve the
    #  writeback if the consumer accepts it.)
    return pl.pallas_call(
        kernel,
        out_shape=jax.ShapeDtypeStruct((N, M, Cp), jnp.float32),
        grid_spec=pltpu.PrefetchScalarGridSpec(
            num_scalar_prefetch=0,
            grid=(N,),
            in_specs=[
                pl.BlockSpec((1, M, K1), lambda n: (n, 0, 0)),    # conv1 patches
                const_spec((K1, 2 * Cp)),                         # [conv1 | proj] weights
                const_spec((1, Cp)),                              # bn1 folded bias
                const_spec((9 * Cp, Cp)),                         # conv2 folded weights
                const_spec((1, Cp)),                              # bn2 + bn_proj bias
            ],
            out_specs=pl.BlockSpec((1, M, Cp), lambda n: (n, 0, 0)),
            scratch_shapes=[pltpu.VMEM((Ho + 2, Wo + 2, Cp), jnp.float32)],
        ),
        compiler_params=pltpu.CompilerParams(
            dimension_semantics=("parallel",),
            vmem_limit_bytes=_vmem_limit_bytes(),
        ),
        cost_estimate=pl.CostEstimate(flops=flops, transcendentals=0,
                                      bytes_accessed=bytes_accessed),
    )(p1, w1cat, b1p, w2p, bcp)


# ----------------------------- ResnetBlock -----------------------------------

def init_resnet_block_params(key, cin, cout, downsample_rate, eps=1e-5):
    """Deterministic synthetic parameters (use_bn=True path; conv bias=False)."""
    ks = jax.random.split(key, 16)

    def conv_w(k, kh, kw, ci, co):
        fan_in = ci * kh * kw
        return jax.random.normal(k, (kh, kw, ci, co), jnp.float32) * (2.0 / fan_in) ** 0.5

    def bn_fold(kg, kb, km, kv, c):
        gamma = 1.0 + 0.1 * jax.random.normal(kg, (c,), jnp.float32)
        beta = 0.1 * jax.random.normal(kb, (c,), jnp.float32)
        mean = 0.05 * jax.random.normal(km, (c,), jnp.float32)
        var = 1.0 + 0.1 * jax.random.uniform(kv, (c,), jnp.float32)
        scale = gamma / jnp.sqrt(var + eps)
        bias = beta - mean * scale
        return scale.reshape(1, c), bias.reshape(1, c)

    has_projection = downsample_rate > 1 or cin != cout

    w1 = conv_w(ks[0], 3, 3, cin, cout)
    s1, b1 = bn_fold(ks[1], ks[2], ks[3], ks[4], cout)
    w2 = conv_w(ks[5], 3, 3, cout, cout)
    s2, b2 = bn_fold(ks[6], ks[7], ks[8], ks[9], cout)
    if has_projection:
        wp = conv_w(ks[10], 1, 1, cin, cout)
        sp, bp = bn_fold(ks[11], ks[12], ks[13], ks[14], cout)
    else:
        wp = jnp.eye(cin, cout, dtype=jnp.float32).reshape(1, 1, cin, cout)
        sp = jnp.ones((1, cout), jnp.float32)
        bp = jnp.zeros((1, cout), jnp.float32)

    return dict(w1=w1, s1=s1, b1=b1, w2=w2, s2=s2, b2=b2, wp=wp, sp=sp, bp=bp)


def resnet_block_forward(x_nchw, params, downsample_rate):
    """Forward pass matching ResnetBlock.forward (use_bn=True, eval-mode BN)."""
    # bf16 BEFORE im2col so the 9x-expanded conv1 patch tensor is half-size in HBM.
    x = jnp.transpose(x_nchw, (0, 2, 3, 1)).astype(jnp.bfloat16)  # NHWC
    N, H, W, Cin = x.shape
    Cout = params["w1"].shape[-1]
    # Lane-dense output channels.  TODO(synk): for Cout=64 blocks, measure whether
    # Cp=Cout (masked stores) beats the padded-compute cost of rounding up to 128.
    Cp = _round_up(Cout, LANE)
    K1 = 9 * Cin
    s = int(downsample_rate)

    p1, Ho, Wo = _im2col_3x3(x, s)                                # (N, M, 9*Cin) bf16
    M = Ho * Wo

    # Fold BN scales into conv weights; pad output channels Cout -> Cp with zeros.
    pad_c = [(0, 0), (0, Cp - Cout)]
    w1f = params["w1"].reshape(K1, Cout) * params["s1"]           # conv1 * bn1.scale
    wrf = params["wp"].reshape(Cin, Cout) * params["sp"]          # proj  * bn_proj.scale
    # 1x1 stride-s projection == the center tap of the stride-s 3x3 patch.
    wr_full = jnp.zeros((K1, Cout), jnp.float32).at[4 * Cin:5 * Cin, :].set(wrf)
    w1cat = jnp.concatenate([jnp.pad(w1f, pad_c), jnp.pad(wr_full, pad_c)],
                            axis=1).astype(jnp.bfloat16)          # (K1, 2*Cp)
    w2f = params["w2"] * params["s2"].reshape(1, 1, 1, Cout)      # conv2 * bn2.scale
    w2p = jnp.zeros((3, 3, Cp, Cp), jnp.float32).at[:, :, :Cout, :Cout].set(w2f)
    w2p = w2p.reshape(9 * Cp, Cp).astype(jnp.bfloat16)            # (9*Cp, Cp)
    b1p = jnp.pad(params["b1"], pad_c)                            # (1, Cp) f32
    bcp = jnp.pad(params["b2"] + params["bp"], pad_c)             # combined bias, f32

    call = functools.partial(_block_call, p1, w1cat, b1p, w2p, bcp,
                             N=N, M=M, K1=K1, Cp=Cp, Ho=Ho, Wo=Wo)
    try:
        out = call(single_buffer_consts=True)
    except Exception:
        # pl.Buffered / pipeline_mode unavailable on this JAX version: fall back to
        # default (double-buffered) constant operands.
        out = call(single_buffer_consts=False)

    if Cp != Cout:
        # Channels [Cout, Cp) are exactly zero: their weight columns and the combined
        # bias are zero-padded and ReLU(0) == 0, so this slice drops only zeros.
        out = out[:, :, :Cout]
    out = out.reshape(N, Ho, Wo, Cout)
    return jnp.transpose(out, (0, 3, 1, 2))                       # back to NCHW (f32)


# ------------------------------ references ------------------------------------

def _ref_forward(x_nchw, params, stride, quantize):
    """Plain-XLA reference (lax convs).

    quantize=True mirrors the kernel's bf16 MXU inputs (x, BN-folded weights) so the
    comparison isolates kernel correctness; quantize=False is the true f32 module
    (checked with a looser tolerance)."""
    q = (lambda a: a.astype(jnp.bfloat16).astype(jnp.float32)) if quantize else (lambda a: a)
    x = q(jnp.transpose(x_nchw, (0, 2, 3, 1)).astype(jnp.float32))
    Cout = params["w1"].shape[-1]
    w1f = q(params["w1"] * params["s1"].reshape(1, 1, 1, Cout))
    w2f = q(params["w2"] * params["s2"].reshape(1, 1, 1, Cout))
    wpf = q(params["wp"] * params["sp"].reshape(1, 1, 1, Cout))

    def conv(inp, w, s, pad):
        return jax.lax.conv_general_dilated(
            inp, w, (s, s), [(pad, pad), (pad, pad)],
            dimension_numbers=("NHWC", "HWIO", "NHWC"))

    y1 = jnp.maximum(conv(x, w1f, stride, 1) + params["b1"], 0.0)
    y2 = conv(y1, w2f, 1, 1) + params["b2"]
    r = conv(x, wpf, stride, 0) + params["bp"]
    out = jnp.maximum(y2 + r, 0.0)
    return jnp.transpose(out, (0, 3, 1, 2))


# --------------------------------- main ---------------------------------------

if __name__ == "__main__":
    key = jax.random.PRNGKey(0)
    k_x, k_p = jax.random.split(key)

    N, CIN, H, W = 2, 4, 16, 16
    COUT, DOWNSAMPLE = 8, 2

    x = jax.random.normal(k_x, (N, CIN, H, W), jnp.float32)       # NCHW like PyTorch
    params = init_resnet_block_params(k_p, CIN, COUT, DOWNSAMPLE)

    # The wrapper is intentionally not jitted so the single-buffered-constants path
    # can fall back gracefully at Mosaic compile time (pallas_call itself still
    # compiles to a TPU kernel).
    out = jax.block_until_ready(resnet_block_forward(x, params, DOWNSAMPLE))

    assert out.shape == (N, COUT, H // DOWNSAMPLE, W // DOWNSAMPLE), out.shape

    # (1) Reference with the same bf16 quantization points as the kernel (tight tol).
    ref_q = jax.block_until_ready(_ref_forward(x, params, DOWNSAMPLE, quantize=True))
    err_q = float(jnp.max(jnp.abs(out - ref_q)))
    assert jnp.allclose(out, ref_q, atol=2e-2, rtol=2e-2), err_q

    # (2) Loose parity check against the true f32 module (kernel uses bf16 MXU inputs).
    ref_f = jax.block_until_ready(_ref_forward(x, params, DOWNSAMPLE, quantize=False))
    err_f = float(jnp.max(jnp.abs(out - ref_f)))
    assert jnp.allclose(out, ref_f, atol=3e-1, rtol=5e-2), err_f

    print("KERNEL_OK")
</pallas_src>

<mosaic_0001>
module attributes {stable_mosaic.version = 11 : i64} {
  func.func @_resnet_block_kernel(%arg0: i32, %arg1: memref<1x64x36xbf16, #tpu.memory_space<vmem>>, %arg2: memref<36x256xbf16, #tpu.memory_space<vmem>>, %arg3: memref<1x128xf32, #tpu.memory_space<vmem>>, %arg4: memref<1152x128xbf16, #tpu.memory_space<vmem>>, %arg5: memref<1x128xf32, #tpu.memory_space<vmem>>, %arg6: memref<1x64x128xf32, #tpu.memory_space<vmem>>, %arg7: memref<10x10x128xf32, #tpu.memory_space<vmem>>) attributes {dimension_semantics = [#tpu.dimension_semantics<parallel>], iteration_bounds = array<i64: 2>, scalar_prefetch = 0 : i64, scratch_operands = 1 : i64, tpu.core_type = #tpu.core_type<tc>, window_params = [{transform_indices = @transform_0, window_bounds = array<i64: 1, 64, 36>}, {pipeline_mode = #tpu.pipeline_mode<synchronous>, transform_indices = @transform_1, window_bounds = array<i64: 36, 256>}, {pipeline_mode = #tpu.pipeline_mode<synchronous>, transform_indices = @transform_2, window_bounds = array<i64: 1, 128>}, {pipeline_mode = #tpu.pipeline_mode<synchronous>, transform_indices = @transform_3, window_bounds = array<i64: 1152, 128>}, {pipeline_mode = #tpu.pipeline_mode<synchronous>, transform_indices = @transform_4, window_bounds = array<i64: 1, 128>}, {transform_indices = @transform_5, window_bounds = array<i64: 1, 64, 128>}]} {
    %c0 = arith.constant 0 : index
    %c0_0 = arith.constant 0 : index
    %c0_1 = arith.constant 0 : index
    %0 = vector.load %arg1[%c0, %c0_0, %c0_1] : memref<1x64x36xbf16, #tpu.memory_space<vmem>>, vector<1x64x36xbf16>
    %1 = vector.shape_cast %0 : vector<1x64x36xbf16> to vector<64x36xbf16>
    %c0_2 = arith.constant 0 : index
    %c0_3 = arith.constant 0 : index
    %2 = vector.load %arg2[%c0_2, %c0_3] : memref<36x256xbf16, #tpu.memory_space<vmem>>, vector<36x256xbf16>
    %cst = arith.constant dense<0.000000e+00> : vector<64x256xf32>
    %3 = tpu.matmul %1, %2, %cst {dimension_numbers = #tpu.dot_dimension_numbers<[1], [0], [0], [1], [0, 0, 1, 1], [], []>} : vector<64x36xbf16>, vector<36x256xbf16>, vector<64x256xf32> -> vector<64x256xf32>
    %4 = vector.extract_strided_slice %3 {offsets = [0, 0], sizes = [64, 128], strides = [1, 1]} : vector<64x256xf32> to vector<64x128xf32>
    %c0_4 = arith.constant 0 : index
    %c0_5 = arith.constant 0 : index
    %5 = vector.load %arg3[%c0_4, %c0_5] : memref<1x128xf32, #tpu.memory_space<vmem>>, vector<1x128xf32>
    %6 = vector.broadcast %5 : vector<1x128xf32> to vector<64x128xf32>
    %7 = arith.addf %4, %6 : vector<64x128xf32>
    %cst_6 = arith.constant 0.000000e+00 : f32
    %8 = vector.broadcast %cst_6 : f32 to vector<64x128xf32>
    %9 = arith.maximumf %7, %8 : vector<64x128xf32>
    %10 = vector.extract_strided_slice %3 {offsets = [0, 128], sizes = [64, 128], strides = [1, 1]} : vector<64x256xf32> to vector<64x128xf32>
    %cst_7 = arith.constant 0.000000e+00 : f32
    %11 = vector.broadcast %cst_7 : f32 to vector<10x10x128xf32>
    %c0_8 = arith.constant 0 : index
    %c0_9 = arith.constant 0 : index
    %c0_10 = arith.constant 0 : index
    %12 = vector.load %arg7[%c0_8, %c0_9, %c0_10] : memref<10x10x128xf32, #tpu.memory_space<vmem>>, vector<10x10x128xf32>
    tpu.vector_store %arg7[%c0_8, %c0_9, %c0_10], %11 {strides = array<i32>} : memref<10x10x128xf32, #tpu.memory_space<vmem>>, vector<10x10x128xf32>,
    %13 = vector.shape_cast %9 : vector<64x128xf32> to vector<8x8x128xf32>
    %c1 = arith.constant 1 : index
    %c1_11 = arith.constant 1 : index
    %c0_12 = arith.constant 0 : index
    %14 = vector.load %arg7[%c1, %c1_11, %c0_12] : memref<10x10x128xf32, #tpu.memory_space<vmem>>, vector<8x8x128xf32>
    tpu.vector_store %arg7[%c1, %c1_11, %c0_12], %13 {strides = array<i32>} : memref<10x10x128xf32, #tpu.memory_space<vmem>>, vector<8x8x128xf32>,
    %c0_13 = arith.constant 0 : index
    %c0_14 = arith.constant 0 : index
    %c0_15 = arith.constant 0 : index
    %15 = vector.load %arg7[%c0_13, %c0_14, %c0_15] : memref<10x10x128xf32, #tpu.memory_space<vmem>>, vector<8x8x128xf32>
    %c0_16 = arith.constant 0 : index
    %c1_17 = arith.constant 1 : index
    %c0_18 = arith.constant 0 : index
    %16 = vector.load %arg7[%c0_16, %c1_17, %c0_18] : memref<10x10x128xf32, #tpu.memory_space<vmem>>, vector<8x8x128xf32>
    %c0_19 = arith.constant 0 : index
    %c2 = arith.constant 2 : index
    %c0_20 = arith.constant 0 : index
    %17 = vector.load %arg7[%c0_19, %c2, %c0_20] : memref<10x10x128xf32, #tpu.memory_space<vmem>>, vector<8x8x128xf32>
    %c1_21 = arith.constant 1 : index
    %c0_22 = arith.constant 0 : index
    %c0_23 = arith.constant 0 : index
    %18 = vector.load %arg7[%c1_21, %c0_22, %c0_23] : memref<10x10x128xf32, #tpu.memory_space<vmem>>, vector<8x8x128xf32>
    %c1_24 = arith.constant 1 : index
    %c1_25 = arith.constant 1 : index
    %c0_26 = arith.constant 0 : index
    %19 = vector.load %arg7[%c1_24, %c1_25, %c0_26] : memref<10x10x128xf32, #tpu.memory_space<vmem>>, vector<8x8x128xf32>
    %c1_27 = arith.constant 1 : index
    %c2_28 = arith.constant 2 : index
    %c0_29 = arith.constant 0 : index
    %20 = vector.load %arg7[%c1_27, %c2_28, %c0_29] : memref<10x10x128xf32, #tpu.memory_space<vmem>>, vector<8x8x128xf32>
    %c2_30 = arith.constant 2 : index
    %c0_31 = arith.constant 0 : index
    %c0_32 = arith.constant 0 : index
    %21 = vector.load %arg7[%c2_30, %c0_31, %c0_32] : memref<10x10x128xf32, #tpu.memory_space<vmem>>, vector<8x8x128xf32>
    %c2_33 = arith.constant 2 : index
    %c1_34 = arith.constant 1 : index
    %c0_35 = arith.constant 0 : index
    %22 = vector.load %arg7[%c2_33, %c1_34, %c0_35] : memref<10x10x128xf32, #tpu.memory_space<vmem>>, vector<8x8x128xf32>
    %c2_36 = arith.constant 2 : index
    %c2_37 = arith.constant 2 : index
    %c0_38 = arith.constant 0 : index
    %23 = vector.load %arg7[%c2_36, %c2_37, %c0_38] : memref<10x10x128xf32, #tpu.memory_space<vmem>>, vector<8x8x128xf32>
    %24 = tpu.concatenate %15, %16, %17, %18, %19, %20, %21, %22, %23 in 2 : vector<8x8x128xf32>, vector<8x8x128xf32>, vector<8x8x128xf32>, vector<8x8x128xf32>, vector<8x8x128xf32>, vector<8x8x128xf32>, vector<8x8x128xf32>, vector<8x8x128xf32>, vector<8x8x128xf32> -> vector<8x8x1152xf32>
    %25 = vector.shape_cast %24 : vector<8x8x1152xf32> to vector<64x1152xf32>
    %26 = arith.truncf %25 : vector<64x1152xf32> to vector<64x1152xbf16>
    %c0_39 = arith.constant 0 : index
    %c0_40 = arith.constant 0 : index
    %27 = vector.load %arg4[%c0_39, %c0_40] : memref<1152x128xbf16, #tpu.memory_space<vmem>>, vector<1152x128xbf16>
    %cst_41 = arith.constant dense<0.000000e+00> : vector<64x128xf32>
    %28 = tpu.matmul %26, %27, %cst_41 {dimension_numbers = #tpu.dot_dimension_numbers<[1], [0], [0], [1], [0, 0, 1, 1], [], []>} : vector<64x1152xbf16>, vector<1152x128xbf16>, vector<64x128xf32> -> vector<64x128xf32>
    %29 = arith.addf %28, %10 : vector<64x128xf32>
    %c0_42 = arith.constant 0 : index
    %c0_43 = arith.constant 0 : index
    %30 = vector.load %arg5[%c0_42, %c0_43] : memref<1x128xf32, #tpu.memory_space<vmem>>, vector<1x128xf32>
    %31 = vector.broadcast %30 : vector<1x128xf32> to vector<64x128xf32>
    %32 = arith.addf %29, %31 : vector<64x128xf32>
    %cst_44 = arith.constant 0.000000e+00 : f32
    %33 = vector.broadcast %cst_44 : f32 to vector<64x128xf32>
    %34 = arith.maximumf %32, %33 : vector<64x128xf32>
    %c0_45 = arith.constant 0 : index
    %c0_46 = arith.constant 0 : index
    %c0_47 = arith.constant 0 : index
    %35 = vector.load %arg6[%c0_45, %c0_46, %c0_47] : memref<1x64x128xf32, #tpu.memory_space<vmem>>, vector<1x64x128xf32>
    %36 = vector.shape_cast %35 : vector<1x64x128xf32> to vector<64x128xf32>
    %37 = vector.shape_cast %34 : vector<64x128xf32> to vector<1x64x128xf32>
    tpu.vector_store %arg6[%c0_45, %c0_46, %c0_47], %37 {strides = array<i32>} : memref<1x64x128xf32, #tpu.memory_space<vmem>>, vector<1x64x128xf32>,
    return
  }
  func.func @transform_0(%arg0: i32) -> (i32, i32, i32) {
    %c0_i32 = arith.constant 0 : i32
    %c0_i32_0 = arith.constant 0 : i32
    %c0_i32_1 = arith.constant 0 : i32
    return %arg0, %c0_i32, %c0_i32_0 : i32, i32, i32
  }
  func.func @transform_1(%arg0: i32) -> (i32, i32) {
    %c0_i32 = arith.constant 0 : i32
    %c0_i32_0 = arith.constant 0 : i32
    %c0_i32_1 = arith.constant 0 : i32
    return %c0_i32, %c0_i32_0 : i32, i32
  }
  func.func @transform_2(%arg0: i32) -> (i32, i32) {
    %c0_i32 = arith.constant 0 : i32
    %c0_i32_0 = arith.constant 0 : i32
    %c0_i32_1 = arith.constant 0 : i32
    return %c0_i32, %c0_i32_0 : i32, i32
  }
  func.func @transform_3(%arg0: i32) -> (i32, i32) {
    %c0_i32 = arith.constant 0 : i32
    %c0_i32_0 = arith.constant 0 : i32
    %c0_i32_1 = arith.constant 0 : i32
    return %c0_i32, %c0_i32_0 : i32, i32
  }
  func.func @transform_4(%arg0: i32) -> (i32, i32) {
    %c0_i32 = arith.constant 0 : i32
    %c0_i32_0 = arith.constant 0 : i32
    %c0_i32_1 = arith.constant 0 : i32
    return %c0_i32, %c0_i32_0 : i32, i32
  }
  func.func @transform_5(%arg0: i32) -> (i32, i32, i32) {
    %c0_i32 = arith.constant 0 : i32
    %c0_i32_0 = arith.constant 0 : i32
    %c0_i32_1 = arith.constant 0 : i32
    return %arg0, %c0_i32, %c0_i32_0 : i32, i32, i32
  }
}

module attributes {stable_mosaic.version = 11 : i64} {
  func.func @_resnet_block_kernel(%arg0: i32, %arg1: memref<1x64x36xbf16, #tpu.memory_space<vmem>>, %arg2: memref<36x256xbf16, #tpu.memory_space<vmem>>, %arg3: memref<1x128xf32, #tpu.memory_space<vmem>>, %arg4: memref<1152x128xbf16, #tpu.memory_space<vmem>>, %arg5: memref<1x128xf32, #tpu.memory_space<vmem>>, %arg6: memref<1x64x128xf32, #tpu.memory_space<vmem>>, %arg7: memref<10x10x128xf32, #tpu.memory_space<vmem>>) attributes {dimension_semantics = [#tpu.dimension_semantics<parallel>], iteration_bounds = array<i64: 2>, scalar_prefetch = 0 : i64, scratch_operands = 1 : i64, tpu.core_type = #tpu.core_type<tc>, window_params = [{transform_indices = @transform_0, window_bounds = array<i64: 1, 64, 36>}, {pipeline_mode = #tpu.pipeline_mode<synchronous>, transform_indices = @transform_1, window_bounds = array<i64: 36, 256>}, {pipeline_mode = #tpu.pipeline_mode<synchronous>, transform_indices = @transform_2, window_bounds = array<i64: 1, 128>}, {pipeline_mode = #tpu.pipeline_mode<synchronous>, transform_indices = @transform_3, window_bounds = array<i64: 1152, 128>}, {pipeline_mode = #tpu.pipeline_mode<synchronous>, transform_indices = @transform_4, window_bounds = array<i64: 1, 128>}, {transform_indices = @transform_5, window_bounds = array<i64: 1, 64, 128>}]} {
    %c0 = arith.constant 0 : index
    %c0_0 = arith.constant 0 : index
    %c0_1 = arith.constant 0 : index
    %0 = vector.load %arg1[%c0, %c0_0, %c0_1] : memref<1x64x36xbf16, #tpu.memory_space<vmem>>, vector<1x64x36xbf16>
    %1 = vector.shape_cast %0 : vector<1x64x36xbf16> to vector<64x36xbf16>
    %c0_2 = arith.constant 0 : index
    %c0_3 = arith.constant 0 : index
    %2 = vector.load %arg2[%c0_2, %c0_3] : memref<36x256xbf16, #tpu.memory_space<vmem>>, vector<36x256xbf16>
    %cst = arith.constant dense<0.000000e+00> : vector<64x256xf32>
    %3 = tpu.matmul %1, %2, %cst {dimension_numbers = #tpu.dot_dimension_numbers<[1], [0], [0], [1], [0, 0, 1, 1], [], []>} : vector<64x36xbf16>, vector<36x256xbf16>, vector<64x256xf32> -> vector<64x256xf32>
    %4 = vector.extract_strided_slice %3 {offsets = [0, 0], sizes = [64, 128], strides = [1, 1]} : vector<64x256xf32> to vector<64x128xf32>
    %c0_4 = arith.constant 0 : index
    %c0_5 = arith.constant 0 : index
    %5 = vector.load %arg3[%c0_4, %c0_5] : memref<1x128xf32, #tpu.memory_space<vmem>>, vector<1x128xf32>
    %6 = vector.broadcast %5 : vector<1x128xf32> to vector<64x128xf32>
    %7 = arith.addf %4, %6 : vector<64x128xf32>
    %cst_6 = arith.constant 0.000000e+00 : f32
    %8 = vector.broadcast %cst_6 : f32 to vector<64x128xf32>
    %9 = arith.maximumf %7, %8 : vector<64x128xf32>
    %10 = vector.extract_strided_slice %3 {offsets = [0, 128], sizes = [64, 128], strides = [1, 1]} : vector<64x256xf32> to vector<64x128xf32>
    %cst_7 = arith.constant 0.000000e+00 : f32
    %11 = vector.broadcast %cst_7 : f32 to vector<10x10x128xf32>
    %c0_8 = arith.constant 0 : index
    %c0_9 = arith.constant 0 : index
    %c0_10 = arith.constant 0 : index
    %12 = vector.load %arg7[%c0_8, %c0_9, %c0_10] : memref<10x10x128xf32, #tpu.memory_space<vmem>>, vector<10x10x128xf32>
    tpu.vector_store %arg7[%c0_8, %c0_9, %c0_10], %11 {strides = array<i32>} : memref<10x10x128xf32, #tpu.memory_space<vmem>>, vector<10x10x128xf32>,
    %13 = vector.shape_cast %9 : vector<64x128xf32> to vector<8x8x128xf32>
    %c1 = arith.constant 1 : index
    %c1_11 = arith.constant 1 : index
    %c0_12 = arith.constant 0 : index
    %14 = vector.load %arg7[%c1, %c1_11, %c0_12] : memref<10x10x128xf32, #tpu.memory_space<vmem>>, vector<8x8x128xf32>
    tpu.vector_store %arg7[%c1, %c1_11, %c0_12], %13 {strides = array<i32>} : memref<10x10x128xf32, #tpu.memory_space<vmem>>, vector<8x8x128xf32>,
    %c0_13 = arith.constant 0 : index
    %c0_14 = arith.constant 0 : index
    %c0_15 = arith.constant 0 : index
    %15 = vector.load %arg7[%c0_13, %c0_14, %c0_15] : memref<10x10x128xf32, #tpu.memory_space<vmem>>, vector<8x8x128xf32>
    %c0_16 = arith.constant 0 : index
    %c1_17 = arith.constant 1 : index
    %c0_18 = arith.constant 0 : index
    %16 = vector.load %arg7[%c0_16, %c1_17, %c0_18] : memref<10x10x128xf32, #tpu.memory_space<vmem>>, vector<8x8x128xf32>
    %c0_19 = arith.constant 0 : index
    %c2 = arith.constant 2 : index
    %c0_20 = arith.constant 0 : index
    %17 = vector.load %arg7[%c0_19, %c2, %c0_20] : memref<10x10x128xf32, #tpu.memory_space<vmem>>, vector<8x8x128xf32>
    %c1_21 = arith.constant 1 : index
    %c0_22 = arith.constant 0 : index
    %c0_23 = arith.constant 0 : index
    %18 = vector.load %arg7[%c1_21, %c0_22, %c0_23] : memref<10x10x128xf32, #tpu.memory_space<vmem>>, vector<8x8x128xf32>
    %c1_24 = arith.constant 1 : index
    %c1_25 = arith.constant 1 : index
    %c0_26 = arith.constant 0 : index
    %19 = vector.load %arg7[%c1_24, %c1_25, %c0_26] : memref<10x10x128xf32, #tpu.memory_space<vmem>>, vector<8x8x128xf32>
    %c1_27 = arith.constant 1 : index
    %c2_28 = arith.constant 2 : index
    %c0_29 = arith.constant 0 : index
    %20 = vector.load %arg7[%c1_27, %c2_28, %c0_29] : memref<10x10x128xf32, #tpu.memory_space<vmem>>, vector<8x8x128xf32>
    %c2_30 = arith.constant 2 : index
    %c0_31 = arith.constant 0 : index
    %c0_32 = arith.constant 0 : index
    %21 = vector.load %arg7[%c2_30, %c0_31, %c0_32] : memref<10x10x128xf32, #tpu.memory_space<vmem>>, vector<8x8x128xf32>
    %c2_33 = arith.constant 2 : index
    %c1_34 = arith.constant 1 : index
    %c0_35 = arith.constant 0 : index
    %22 = vector.load %arg7[%c2_33, %c1_34, %c0_35] : memref<10x10x128xf32, #tpu.memory_space<vmem>>, vector<8x8x128xf32>
    %c2_36 = arith.constant 2 : index
    %c2_37 = arith.constant 2 : index
    %c0_38 = arith.constant 0 : index
    %23 = vector.load %arg7[%c2_36, %c2_37, %c0_38] : memref<10x10x128xf32, #tpu.memory_space<vmem>>, vector<8x8x128xf32>
    %24 = tpu.concatenate %15, %16, %17, %18, %19, %20, %21, %22, %23 in 2 : vector<8x8x128xf32>, vector<8x8x128xf32>, vector<8x8x128xf32>, vector<8x8x128xf32>, vector<8x8x128xf32>, vector<8x8x128xf32>, vector<8x8x128xf32>, vector<8x8x128xf32>, vector<8x8x128xf32> -> vector<8x8x1152xf32>
    %25 = vector.shape_cast %24 : vector<8x8x1152xf32> to vector<64x1152xf32>
    %26 = arith.truncf %25 : vector<64x1152xf32> to vector<64x1152xbf16>
    %c0_39 = arith.constant 0 : index
    %c0_40 = arith.constant 0 : index
    %27 = vector.load %arg4[%c0_39, %c0_40] : memref<1152x128xbf16, #tpu.memory_space<vmem>>, vector<1152x128xbf16>
    %cst_41 = arith.constant dense<0.000000e+00> : vector<64x128xf32>
    %28 = tpu.matmul %26, %27, %cst_41 {dimension_numbers = #tpu.dot_dimension_numbers<[1], [0], [0], [1], [0, 0, 1, 1], [], []>} : vector<64x1152xbf16>, vector<1152x128xbf16>, vector<64x128xf32> -> vector<64x128xf32>
    %29 = arith.addf %28, %10 : vector<64x128xf32>
    %c0_42 = arith.constant 0 : index
    %c0_43 = arith.constant 0 : index
    %30 = vector.load %arg5[%c0_42, %c0_43] : memref<1x128xf32, #tpu.memory_space<vmem>>, vector<1x128xf32>
    %31 = vector.broadcast %30 : vector<1x128xf32> to vector<64x128xf32>
    %32 = arith.addf %29, %31 : vector<64x128xf32>
    %cst_44 = arith.constant 0.000000e+00 : f32
    %33 = vector.broadcast %cst_44 : f32 to vector<64x128xf32>
    %34 = arith.maximumf %32, %33 : vector<64x128xf32>
    %c0_45 = arith.constant 0 : index
    %c0_46 = arith.constant 0 : index
    %c0_47 = arith.constant 0 : index
    %35 = vector.load %arg6[%c0_45, %c0_46, %c0_47] : memref<1x64x128xf32, #tpu.memory_space<vmem>>, vector<1x64x128xf32>
    %36 = vector.shape_cast %35 : vector<1x64x128xf32> to vector<64x128xf32>
    %37 = vector.shape_cast %34 : vector<64x128xf32> to vector<1x64x128xf32>
    tpu.vector_store %arg6[%c0_45, %c0_46, %c0_47], %37 {strides = array<i32>} : memref<1x64x128xf32, #tpu.memory_space<vmem>>, vector<1x64x128xf32>,
    return
  }
  func.func @transform_0(%arg0: i32) -> (i32, i32, i32) {
    %c0_i32 = arith.constant 0 : i32
    %c0_i32_0 = arith.constant 0 : i32
    %c0_i32_1 = arith.constant 0 : i32
    return %arg0, %c0_i32, %c0_i32_0 : i32, i32, i32
  }
  func.func @transform_1(%arg0: i32) -> (i32, i32) {
    %c0_i32 = arith.constant 0 : i32
    %c0_i32_0 = arith.constant 0 : i32
    %c0_i32_1 = arith.constant 0 : i32
    return %c0_i32, %c0_i32_0 : i32, i32
  }
  func.func @transform_2(%arg0: i32) -> (i32, i32) {
    %c0_i32 = arith.constant 0 : i32
    %c0_i32_0 = arith.constant 0 : i32
    %c0_i32_1 = arith.constant 0 : i32
    return %c0_i32, %c0_i32_0 : i32, i32
  }
  func.func @transform_3(%arg0: i32) -> (i32, i32) {
    %c0_i32 = arith.constant 0 : i32
    %c0_i32_0 = arith.constant 0 : i32
    %c0_i32_1 = arith.constant 0 : i32
    return %c0_i32, %c0_i32_0 : i32, i32
  }
  func.func @transform_4(%arg0: i32) -> (i32, i32) {
    %c0_i32 = arith.constant 0 : i32
    %c0_i32_0 = arith.constant 0 : i32
    %c0_i32_1 = arith.constant 0 : i32
    return %c0_i32, %c0_i32_0 : i32, i32
  }
  func.func @transform_5(%arg0: i32) -> (i32, i32, i32) {
    %c0_i32 = arith.constant 0 : i32
    %c0_i32_0 = arith.constant 0 : i32
    %c0_i32_1 = arith.constant 0 : i32
    return %arg0, %c0_i32, %c0_i32_0 : i32, i32, i32
  }
}

</mosaic_0001>

<bundles_post_ra>
// kernel: tpu_custom_call.1
= control target key start
LH: loop header
LB: loop body
LE: loop exit
PB: predicated region body
PF: predicated region fallthrough
CT: control target
= control target key end

     0   :  { %10 = vsyncpa [#allocation4], 0  ;;  %s2501_s0 = inlined_call_operand.vmem [shape: bf16[2,64,36], index: 0, kind: input, shape index: {}]   ;;  %s2502_s1 = inlined_call_operand.vmem [shape: bf16[36,256], index: 1, kind: input, shape index: {}]   ;;  %s2503_s2 = inlined_call_operand.vmem [shape: f32[1,128], index: 2, kind: input, shape index: {}]   ;;  %s2504_s3 = inlined_call_operand.hbm [shape: bf16[1152,128], index: 3, kind: input, shape index: {}]   ;;  %s2505_s4 = inlined_call_operand.vmem [shape: f32[1,128], index: 4, kind: input, shape index: {}]   ;;  %s2506_s5 = inlined_call_operand.hbm [shape: f32[2,64,128], index: 5, kind: output, shape index: {}]  }
   0x1   :  { %11 = vsyncpa [#allocation5], 0 }
   0x2   :  { %13 = vsyncpa [#allocation5 + $0x1], 0  ;;  %s2113_s18 = smov 0   ;;  %s2115_s19 = smov 0  }
   0x3   :  { %s2117_s20 = smov 0   ;;  %s2119_s21 = smov 0  }
   0x4 LB: > { %s2134_s22 = sadd.s32 4294967295, %s2075_s21   ;;  %s1490_s23 = sadd.s32 4294967294, %s2075_s21   ;;  %s2075_s21 = sphi %s2119_s21, %s2512_s21   ;;  %s2071_s20 = sphi %s2117_s20, %s2511_s20   ;;  %s2067_s19 = sphi %s2115_s19, %s2510_s19   ;;  %s2063_s18 = sphi %s2113_s18, %s2509_s18  }
   0x5   : > { %s2138_s24 = sadd.s32 1, %s2075_s21   ;;  %s136_s25 = sadd.s32 1, %s2071_s20 }
   0x6   : > { %s133_s26 = ssub.s32 %s2075_s21, %s2138_s24  ;;  %p146_p0 = scmp.ne.s32.totalorder %s2071_s20, %s2067_s19 }
   0x7   : > { %p134_p1 = scmp.eq.s32.totalorder %s133_s26, 0  ;;  %p147_p2 = scmp.eq.s32.totalorder %s2134_s22, 1 }
   0x8   : > { %p152_p3 = scmp.ne.s32.totalorder %s2067_s19, %s2063_s18  ;;  %p153_p4 = scmp.eq.s32.totalorder %s1490_s23, 1 }
   0x9   : > { %s2149_s27 = scalar_select %p134_p1, %s2071_s20, %s136_s25  }
   0xa   : > { %p2151_p5 = por %p147_p2, %p146_p0  ;;  %p2155_p6 = por %p153_p4, %p152_p3 }
   0xb   : > { %p1491_p7 = scmp.ge.s32.totalorder %s2075_s21, 1  ;;  %p160_p8 = scmp.lt.s32.totalorder %s2075_s21, 3 }
   0xc   : > { %p1936_p9 = scmp.eq.s32.totalorder %s2134_s22, 0  ;;  %s177_s7 = sshll.u32 %s2504_s3, 4  ;;  %s178_s7 = int_to_ptr.hbm [resolvable:$true] %s177_s7 }
   0xd   : > { %p161_p10 = pnand %p1491_p7, %p160_p8  ;;  %s2077_s8 = smov [#allocation3]  }
   0xe   : > { %s179_s9 = sshll.u32 %s2077_s8, 4  ;;  %s2078_s10 = smov 64   ;;  %s180_s9 = int_to_ptr.vmem [resolvable:$true] %s179_s9 }
   0xf   : > { %p1928_p11 = pneg %p161_p10  ;;  %s2079_s11 = smov 4  }
  0x10   : > { %206 = sbr.rel (%p161_p10) target bundleno = 511 (0x1ff), region = 40 }
  0x11   : > { %p1929_p12 = pnand %p1936_p9, %p1928_p11 }
  0x13   : > { %1931 = dma.hbm_to_vmem [thread:$0]  (!%p1929_p12), %s178_s7, 9216, %s180_s9, [#allocation4], %s2078_s10, %s2078_s10, %s2079_s11  }
  0x15   : > { %2054 = dma.done.wait (%p1936_p9), [#allocation4], 9216  }
  0x16   : > { %2056 = vsyncadd (%p1936_p9), [#allocation4], 4294958080  ;;  %p235_p13 = scmp.lt.s32.totalorder %s2134_s22, 1  ;;  %v253_v0 = vld [vmem:[%s2502_s1 + $0x20] sm:$0x33]  ;;  %vm312_vm0 = vcmask 1041408  }
  0x17   : > { %v287_v1 = vunpack.c.l.b16 %v253_v0  ;;  %v1525_v3 = vld [vmem:[%s2502_s1 + $0x10] sm:$0xf]  ;;  %v1840_v4 = vld [vmem:[%s2502_s1 + $0x14] sm:$0xf0]  ;;  %v1517_v7 = vld [vmem:[%s2502_s1] sm:$0xf]  ;;  %v288_v12 = vunpack.c.h.b16 %v253_v0 }
  0x18   : > { %s236_s14 = scalar_select %p235_p13, %s2134_s22, 1  ;;  %v1526_v6 = vor.u32 %v1840_v4, %v1525_v3  ;;  %v1838_v8 = vld [vmem:[%s2502_s1 + $0x4] sm:$0xf0]  ;;  %vm299_vm1 = vcmask 293888   ;;  %v1848_v13 = vld [vmem:[#allocation3 + $0x38] sm:$0xff]  ;;  %v1847_v18 = vld [vmem:[#allocation3 + $0x30] sm:$0xff] }
  0x19   : > { %v293_v2 = vpack.c.b16 %v287_v1, %v287_v1  ;;  %v1518_v9 = vor.u32 %v1838_v8, %v1517_v7  ;;  %v1864_v14 = vld [vmem:[#allocation3 + $0xb8] sm:$0xff]  ;;  %v294_v15 = vpack.c.b16 %v288_v12, %v288_v12  ;;  %v1839_v16 = vld [vmem:[%s2502_s1 + $0x14] sm:$0xf]  ;;  %1111 = vmatpush.bf16.msra.mxu2 %v1848_v13  ;;  %1914 = vmatpush.bf16.msra.mxu3 %v1848_v13  ;;  %v1837_v22 = vld [vmem:[%s2502_s1 + $0x4] sm:$0xf]  ;;  %v2080_v33 = vmov 0.0  }
  0x1a   : > { %s1832_s7 = sshll.u32 %s236_s14, 5  ;;  %v1527_v17 = vld [vmem:[%s2502_s1 + $0x18] sm:$0xf0]  ;;  %v1863_v19 = vld [vmem:[#allocation3 + $0xb0] sm:$0xff]  ;;  %v1519_v23 = vld [vmem:[%s2502_s1 + $0x8] sm:$0xf0] }
  0x1b   : > { %v314_v5 = vsel %vm312_vm0, %v293_v2, 0  ;;  %s2192_s10 = scalar_lea.vmem %s2501_s0, %s1832_s7  ;;  %v317_v20 = vsel %vm312_vm0, %v294_v15, 0  ;;  %v1530_v21 = vor.u32 %v1839_v16, %v1527_v17  ;;  %v1522_v24 = vor.u32 %v1837_v22, %v1519_v23  ;;  %v1846_v26 = vld [vmem:[#allocation3 + $0x28] sm:$0xff]  ;;  %v1872_v28 = vld [vmem:[#allocation3 + $0xf8] sm:$0xff]  ;;  %v1845_v29 = vld [vmem:[#allocation3 + $0x20] sm:$0xff]  ;;  %399 = vst [vmem:[#allocation2 + $0x10] sm:$0xff] %v2080_v33 }
  0x1c   : > { %324 = vmatpush.bf16.msra.mxu0 %v314_v5  ;;  %v1833_v10 = vld [vmem:[%s2192_s10] sm:$0xff]  ;;  %v1834_v11 = vld [vmem:[%s2192_s10 + $0x8] sm:$0xff]  ;;  %353 = vmatpush.bf16.msra.mxu1 %v317_v20  ;;  %v1835_v25 = vld [vmem:[%s2192_s10 + $0x10] sm:$0xff]  ;;  %400 = vst [vmem:[#allocation2 + $0x18] sm:$0x3] %v2080_v33  ;;  %s232_s30 = sand.u32 1, %s2067_s19  }
  0x1d   : > { %1112 = vmatpush.bf16.msra.mxu2 %v1847_v18  ;;  %1915 = vmatpush.bf16.msra.mxu3 %v1847_v18  ;;  %v1862_v27 = vld [vmem:[#allocation3 + $0xa8] sm:$0xff]  ;;  %v1861_v30 = vld [vmem:[#allocation3 + $0xa0] sm:$0xff]  ;;  %v1871_v31 = vld [vmem:[#allocation3 + $0xf0] sm:$0xff]  ;;  %397 = vst [vmem:[#allocation2] sm:$0xff] %v2080_v33  ;;  %s1496_s8 = sshll.u32 %s232_s30, 6  ;;  %s2029_s26 = scalar_lea.hbm %s2506_s5, 128 }
  0x1e   : > { %v1836_v32 = vld [vmem:[%s2192_s10 + $0x18] sm:$0xff]  ;;  %v1870_v36 = vld [vmem:[#allocation3 + $0xe8] sm:$0xff]  ;;  %398 = vst [vmem:[#allocation2 + $0x8] sm:$0x3] %v2080_v33  ;;  %v1843_v37 = vld [vmem:[#allocation3 + $0x10] sm:$0xff]  ;;  %s2424_s9 = scalar_lea.vmem [#allocation6], %s1496_s8 }
  0x1f   : > { %v1844_v34 = vld [vmem:[#allocation3 + $0x18] sm:$0xff]  ;;  %401 = vst [vmem:[#allocation2 + $0x20] sm:$0xff] %v2080_v33  ;;  %v1859_v38 = vld [vmem:[#allocation3 + $0x90] sm:$0xff]  ;;  %v1869_v39 = vld [vmem:[#allocation3 + $0xe0] sm:$0xff]  ;;  %s1913_s10 = sshll.u32 %s2134_s22, 6  ;;  %s1413_s14 = sshll.u32 %s2424_s9, 4  ;;  %s1414_s14 = int_to_ptr.vmem [resolvable:$true] %s1413_s14 }
  0x20   : > { %325 = vmatpush.bf16.msra.mxu0 %v1526_v6  ;;  %354 = vmatpush.bf16.msra.mxu1 %v1530_v21  ;;  %v1860_v35 = vld [vmem:[#allocation3 + $0x98] sm:$0xff]  ;;  %402 = vst [vmem:[#allocation2 + $0x28] sm:$0x3] %v2080_v33  ;;  %v1842_v40 = vld [vmem:[#allocation3 + $0x8] sm:$0xff]  ;;  %v1841_v43 = vld [vmem:[#allocation3] sm:$0xff]  ;;  %s1412_s13 = scalar_lea.hbm %s2506_s5, %s1913_s10  ;;  %s1401_s22 = scalar_lea.sflag [#allocation5], %s232_s30 }
  0x21   : > { %1113 = vmatpush.bf16.msra.mxu2 %v1846_v26  ;;  %1916 = vmatpush.bf16.msra.mxu3 %v1846_v26  ;;  %403 = vst [vmem:[#allocation2 + $0x30] sm:$0xff] %v2080_v33  ;;  %v1858_v41 = vld [vmem:[#allocation3 + $0x88] sm:$0xff]  ;;  %v1868_v42 = vld [vmem:[#allocation3 + $0xd8] sm:$0xff]  ;;  %v1857_v44 = vld [vmem:[#allocation3 + $0x80] sm:$0xff]  ;;  %s1415_s15 = sshll.u32 %s1412_s13, 4  ;;  %s1416_s15 = int_to_ptr.hbm [resolvable:$true] %s1415_s15 }
  0x22   : > { %404 = vst [vmem:[#allocation2 + $0x38] sm:$0x3] %v2080_v33  ;;  %v1867_v45 = vld [vmem:[#allocation3 + $0xd0] sm:$0xff]  ;;  %v1866_v46 = vld [vmem:[#allocation3 + $0xc8] sm:$0xff]  ;;  %v1880_v47 = vld [vmem:[#allocation3 + $0x138] sm:$0xff]  ;;  %s2023_s16 = sshra.s32 %s1416_s15, 4  ;;  %s2024_s16 = int_to_ptr.hbm [resolvable:$true] %s2023_s16 }
  0x23   : > { %405 = vst [vmem:[#allocation2 + $0x40] sm:$0xff] %v2080_v33  ;;  %v1865_v48 = vld [vmem:[#allocation3 + $0xc0] sm:$0xff]  ;;  %v1879_v49 = vld [vmem:[#allocation3 + $0x130] sm:$0xff]  ;;  %v1878_v50 = vld [vmem:[#allocation3 + $0x128] sm:$0xff]  ;;  %s2025_s17 = scalar_lea.hbm %s2024_s16, 64  ;;  %p2030_p3 = scmp.lt.s32.totalorder %s2024_s16, %s2506_s5 }
  0x24   : > { %326 = vmatpush.bf16.msra.mxu0 %v1518_v9  ;;  %355 = vmatpush.bf16.msra.mxu1 %v1522_v24  ;;  %406 = vst [vmem:[#allocation2 + $0x48] sm:$0x3] %v2080_v33  ;;  %v1877_v51 = vld [vmem:[#allocation3 + $0x120] sm:$0xff]  ;;  %v1876_v53 = vld [vmem:[#allocation3 + $0x118] sm:$0xff]  ;;  %v1875_v56 = vld [vmem:[#allocation3 + $0x110] sm:$0xff]  ;;  %p2026_p0 = scmp.ne.s32.totalorder %s2024_s16, %s2025_s17  ;;  %p2031_p4 = scmp.lt.s32.totalorder %s2029_s26, %s2025_s17 }
  0x25   : > { %1114 = vmatpush.bf16.msra.mxu2 %v1845_v29  ;;  %1917 = vmatpush.bf16.msra.mxu3 %v1845_v29  ;;  %407 = vst [vmem:[#allocation2 + $0x50] sm:$0xff] %v2080_v33  ;;  %v2242_v52 = vld [vmem:[%s2503_s2] ss:$0 sm:$0xff]  ;;  %v1874_v58 = vld [vmem:[#allocation3 + $0x108] sm:$0xff]  ;;  %v1856_v4 = vld [vmem:[#allocation3 + $0x78] sm:$0xff] }
  0x26   : > { %408 = vst [vmem:[#allocation2 + $0x58] sm:$0x3] %v2080_v33  ;;  %v442_v61 = vld [vmem:[#allocation2 + $0x2] sm:$0xff]  ;;  %v1896_v5 = vld [vmem:[#allocation3 + $0x1b8] sm:$0xff]  ;;  %v1855_v9 = vld [vmem:[#allocation3 + $0x70] sm:$0xff]  ;;  %p2027_p1 = pnand %p2026_p0, %p2151_p5  ;;  %p2032_p7 = por %p2031_p4, %p2030_p3 }
  0x27   : > { %1531 = vmatmul.msk.bf16.vlgmr.msra.gmra.mxu0 %vm299_vm1, %v1833_v10  ;;  %1535 = vmatmul.msk.bf16.vlgmr.msra.gmra.mxu1 %vm299_vm1, %v1833_v10  ;;  %409 = vst [vmem:[#allocation2 + $0x60] sm:$0xff] %v2080_v33  ;;  %v1873_v62 = vld [vmem:[#allocation3 + $0x100] sm:$0xff]  ;;  %v1895_v10 = vld [vmem:[#allocation3 + $0x1b0] sm:$0xff]  ;;  %v1894_v17 = vld [vmem:[#allocation3 + $0x1a8] sm:$0xff] }
  0x28   : > { %1169 = vmatpush.bf16.msrb.mxu0 %v1864_v14  ;;  %1198 = vmatpush.bf16.msrb.mxu1 %v1872_v28  ;;  %410 = vst [vmem:[#allocation2 + $0x68] sm:$0x3] %v2080_v33  ;;  %v1854_v14 = vld [vmem:[#allocation3 + $0x68] sm:$0xff]  ;;  %v1904_v18 = vld [vmem:[#allocation3 + $0x1f8] sm:$0xff]  ;;  %v1853_v22 = vld [vmem:[#allocation3 + $0x60] sm:$0xff]  ;;  %p2028_p2 = pneg %p2027_p1 }
  0x29   : > { %1115 = vmatpush.bf16.msra.mxu2 %v1844_v34  ;;  %1918 = vmatpush.bf16.msra.mxu3 %v1844_v34  ;;  %411 = vst [vmem:[#allocation2 + $0x70] sm:$0xff] %v2080_v33  ;;  %v1893_v23 = vld [vmem:[#allocation3 + $0x1a0] sm:$0xff]  ;;  %v1903_v24 = vld [vmem:[#allocation3 + $0x1f0] sm:$0xff]  ;;  %v1852_v29 = vld [vmem:[#allocation3 + $0x58] sm:$0xff] }
  0x2a   : > { %412 = vst [vmem:[#allocation2 + $0x78] sm:$0x3] %v2080_v33  ;;  %v1851_v34 = vld [vmem:[#allocation3 + $0x50] sm:$0xff]  ;;  %p2033_p8 = pnand %p2032_p7, %p2028_p2 }
  0x2b   : > { %413 = vst [vmem:[#allocation2 + $0x80] sm:$0xff] %v2080_v33 }
  0x2c   : > { %1170 = vmatpush.bf16.msrb.mxu0 %v1863_v19  ;;  %1199 = vmatpush.bf16.msrb.mxu1 %v1871_v31  ;;  %414 = vst [vmem:[#allocation2 + $0x88] sm:$0x3] %v2080_v33  ;;  %v1902_v31 = vld [vmem:[#allocation3 + $0x1e8] sm:$0xff] }
  0x2d   : > { %1116 = vmatpush.bf16.msra.mxu2 %v1843_v37  ;;  %1919 = vmatpush.bf16.msra.mxu3 %v1843_v37  ;;  %415 = vst [vmem:[#allocation2 + $0x90] sm:$0xff] %v2080_v33 }
  0x2e   : > { %416 = vst [vmem:[#allocation2 + $0x98] sm:$0x3] %v2080_v33 }
  0x30   : > { %1171 = vmatpush.bf16.msrb.mxu0 %v1862_v27  ;;  %1200 = vmatpush.bf16.msrb.mxu1 %v1870_v36  ;;  %v1901_v36 = vld [vmem:[#allocation3 + $0x1e0] sm:$0xff] }
  0x31   : > { %1117 = vmatpush.bf16.msra.mxu2 %v1842_v40  ;;  %1920 = vmatpush.bf16.msra.mxu3 %v1842_v40 }
  0x34   : > { %1172 = vmatpush.bf16.msrb.mxu0 %v1861_v30  ;;  %1201 = vmatpush.bf16.msrb.mxu1 %v1869_v39  ;;  %v1892_v30 = vld [vmem:[#allocation3 + $0x198] sm:$0xff] }
  0x35   : > { %1118 = vmatpush.bf16.msra.mxu2 %v1841_v43  ;;  %1921 = vmatpush.bf16.msra.mxu3 %v1841_v43 }
  0x37   : > { %1532 = vmatmul.msk.bf16.gmra.mxu0 %vm299_vm1, %v1834_v11  ;;  %1536 = vmatmul.msk.bf16.gmra.mxu1 %vm299_vm1, %v1834_v11 }
  0x38   : > { %1173 = vmatpush.bf16.msrb.mxu0 %v1860_v35  ;;  %1202 = vmatpush.bf16.msrb.mxu1 %v1868_v42  ;;  %v1891_v35 = vld [vmem:[#allocation3 + $0x190] sm:$0xff] }
  0x39   : > { %1227 = vmatpush.bf16.msrb.mxu2 %v1880_v47  ;;  %1140 = vmatpush.bf16.msrb.mxu3 %v1856_v4  ;;  %v1887_v4 = vld [vmem:[#allocation3 + $0x170] sm:$0xff] }
  0x3c   : > { %1174 = vmatpush.bf16.msrb.mxu0 %v1859_v38  ;;  %1203 = vmatpush.bf16.msrb.mxu1 %v1867_v45  ;;  %v1900_v45 = vld [vmem:[#allocation3 + $0x1d8] sm:$0xff] }
  0x3d   : > { %1228 = vmatpush.bf16.msrb.mxu2 %v1879_v49  ;;  %1141 = vmatpush.bf16.msrb.mxu3 %v1855_v9  ;;  %v1889_v49 = vld [vmem:[#allocation3 + $0x180] sm:$0xff] }
  0x40   : > { %1175 = vmatpush.bf16.msrb.mxu0 %v1858_v41  ;;  %1204 = vmatpush.bf16.msrb.mxu1 %v1866_v46  ;;  %v1850_v41 = vld [vmem:[#allocation3 + $0x48] sm:$0xff] }
  0x41   : > { %1229 = vmatpush.bf16.msrb.mxu2 %v1878_v50  ;;  %1142 = vmatpush.bf16.msrb.mxu3 %v1854_v14  ;;  %v1899_v50 = vld [vmem:[#allocation3 + $0x1d0] sm:$0xff] }
  0x44   : > { %1176 = vmatpush.bf16.msrb.mxu0 %v1857_v44  ;;  %1205 = vmatpush.bf16.msrb.mxu1 %v1865_v48  ;;  %v1890_v44 = vld [vmem:[#allocation3 + $0x188] sm:$0xff]  ;;  %v1849_v48 = vld [vmem:[#allocation3 + $0x40] sm:$0xff] }
  0x45   : > { %1230 = vmatpush.bf16.msrb.mxu2 %v1877_v51  ;;  %1143 = vmatpush.bf16.msrb.mxu3 %v1853_v22 }
  0x47   : > { %1533 = vmatmul.msk.bf16.gmra.mxu0 %vm299_vm1, %v1835_v25  ;;  %1537 = vmatmul.msk.bf16.gmra.mxu1 %vm299_vm1, %v1835_v25 }
  0x48   : > { %1285 = vmatpush.bf16.msra.mxu0 %v1896_v5  ;;  %1314 = vmatpush.bf16.msra.mxu1 %v1904_v18 }
  0x49   : > { %1231 = vmatpush.bf16.msrb.mxu2 %v1876_v53  ;;  %1144 = vmatpush.bf16.msrb.mxu3 %v1852_v29  ;;  %v1907_v29 = vld [vmem:[#allocation3 + $0x210] sm:$0xff] }
  0x4c   : > { %1286 = vmatpush.bf16.msra.mxu0 %v1895_v10  ;;  %1315 = vmatpush.bf16.msra.mxu1 %v1903_v24 }
  0x4d   : > { %1232 = vmatpush.bf16.msrb.mxu2 %v1875_v56  ;;  %1145 = vmatpush.bf16.msrb.mxu3 %v1851_v34  ;;  %v1905_v34 = vld [vmem:[#allocation3 + $0x200] sm:$0xff] }
  0x50   : > { %1287 = vmatpush.bf16.msra.mxu0 %v1894_v17  ;;  %1316 = vmatpush.bf16.msra.mxu1 %v1902_v31  ;;  %v1909_v17 = vld [vmem:[#allocation3 + $0x220] sm:$0xff] }
  0x51   : > { %1233 = vmatpush.bf16.msrb.mxu2 %v1874_v58  ;;  %1146 = vmatpush.bf16.msrb.mxu3 %v1850_v41  ;;  %v1881_v41 = vld [vmem:[#allocation3 + $0x140] sm:$0xff] }
  0x54   : > { %1288 = vmatpush.bf16.msra.mxu0 %v1893_v23  ;;  %1317 = vmatpush.bf16.msra.mxu1 %v1901_v36  ;;  %v1884_v36 = vld [vmem:[#allocation3 + $0x158] sm:$0xff] }
  0x55   : > { %1234 = vmatpush.bf16.msrb.mxu2 %v1873_v62  ;;  %1147 = vmatpush.bf16.msrb.mxu3 %v1849_v48  ;;  %v1888_v62 = vld [vmem:[#allocation3 + $0x178] sm:$0xff] }
  0x57   : > { %1534 = vmatmul.msk.bf16.gmra.mxu0 %vm299_vm1, %v1836_v32  ;;  %1538 = vmatmul.msk.bf16.gmra.mxu1 %vm299_vm1, %v1836_v32 }
  0x58   : > { %1289 = vmatpush.bf16.msra.mxu0 %v1892_v30  ;;  %1318 = vmatpush.bf16.msra.mxu1 %v1900_v45  ;;  %v1885_v30 = vld [vmem:[#allocation3 + $0x160] sm:$0xff]  ;;  %v490_v45 = vld [vmem:[#allocation2 + $0x91] sm:$0xff] }
  0x5c   : > { %1290 = vmatpush.bf16.msra.mxu0 %v1891_v35  ;;  %1319 = vmatpush.bf16.msra.mxu1 %v1899_v50  ;;  %v434_v35 = vld [vmem:[#allocation2 + $0x1] sm:$0xff]  ;;  %v498_v50 = vld [vmem:[#allocation2 + $0x92] sm:$0xff] }
  0x60   : > { %1291 = vmatpush.bf16.msra.mxu0 %v1890_v44 }
  0x64   : > { %1292 = vmatpush.bf16.msra.mxu0 %v1889_v49 }
  0xa4   : > { %v328_v54 = vpop.f32.mrf.mxu0 }
  0xa5   : > { %v381_v55 = vadd.f32 %v2242_v52, %v328_v54 }
  0xa7   : > { %v2245_v57 = vmax.f32 %v381_v55, 0.0 }
  0xa9   : > { %418 = vst [vmem:[#allocation2 + $0x11] sm:$0xff] %v2245_v57 }
  0xac   : > { %v330_v59 = vpop.f32.mrf.mxu0 }
  0xad   : > { %v382_v60 = vadd.f32 %v2242_v52, %v330_v59  ;;  %v1898_v59 = vld [vmem:[#allocation3 + $0x1c8] sm:$0xff] }
  0xae   : > { %1320 = vmatpush.bf16.msra.mxu1 %v1898_v59 }
  0xaf   : > { %v2249_v63 = vmax.f32 %v382_v60, 0.0  ;;  %v1912_v60 = vld [vmem:[#allocation3 + $0x238] sm:$0xff] }
  0xb0   : > { %v427_v0 = vld [vmem:[#allocation2 + $0x10] sm:$0xff] }
  0xb1   : > { %v2251_v1 = vld [vmem:[#allocation2 + $0x12] sm:$0xff]  ;;  %419 = vst [vmem:[#allocation2 + $0x21] sm:$0xff] %v2249_v63  ;;  %v499_v2 = vpack.c.bf16 %v427_v0, %v2080_v33  ;;  %v503_v58 = vpack.c.bf16 %v2249_v63, %v2245_v57 }
  0xb2   : > { %v501_v3 = vpack.c.bf16 %v2251_v1, %v442_v61 }
  0xb3   : > { %1119 = vmatmul.bf16.vlgmr.msra.gmra.mxu2 %v499_v2  ;;  %v1911_v2 = vld [vmem:[#allocation3 + $0x230] sm:$0xff] }
  0xb4   : > { %1177 = vmatmul.bf16.vlgmr.msrb.gmra.mxu0 %v501_v3  ;;  %v333_v6 = vpop.f32.mrf.mxu0  ;;  %1343 = vmatpush.bf16.msra.mxu2 %v1912_v60  ;;  %v1897_v3 = vld [vmem:[#allocation3 + $0x1c0] sm:$0xff] }
  0xb5   : > { %v383_v7 = vadd.f32 %v2242_v52, %v333_v6  ;;  %1321 = vmatpush.bf16.msra.mxu1 %v1897_v3 }
  0xb7   : > { %v2257_v8 = vmax.f32 %v383_v7, 0.0 }
  0xb8   : > { %v451_v11 = vld [vmem:[#allocation2 + $0x20] sm:$0xff]  ;;  %1344 = vmatpush.bf16.msra.mxu2 %v1911_v2 }
  0xb9   : > { %v2259_v12 = vld [vmem:[#allocation2 + $0x22] sm:$0xff]  ;;  %420 = vst [vmem:[#allocation2 + $0x31] sm:$0xff] %v2257_v8  ;;  %v502_v13 = vpack.c.bf16 %v451_v11, %v427_v0  ;;  %v2264_v15 = vpack.c.bf16 %v2257_v8, %v2249_v63 }
  0xba   : > { %v504_v16 = vpack.c.bf16 %v2259_v12, %v2251_v1 }
  0xbb   : > { %1206 = vmatmul.bf16.vlgmr.msrb.gmra.mxu1 %v502_v13 }
  0xbc   : > { %v335_v19 = vpop.f32.mrf.mxu0 }
  0xbd   : > { %v384_v20 = vadd.f32 %v2242_v52, %v335_v19 }
  0xbf   : > { %v2269_v21 = vmax.f32 %v384_v20, 0.0 }
  0xc0   : > { %v429_v25 = vld [vmem:[#allocation2 + $0x30] sm:$0xff] }
  0xc1   : > { %v2271_v26 = vld [vmem:[#allocation2 + $0x32] sm:$0xff]  ;;  %421 = vst [vmem:[#allocation2 + $0x41] sm:$0xff] %v2269_v21  ;;  %v2274_v27 = vpack.c.bf16 %v429_v25, %v451_v11  ;;  %v1910_v11 = vld [vmem:[#allocation3 + $0x228] sm:$0xff]  ;;  %v512_v24 = vpack.c.bf16 %v2269_v21, %v2257_v8  ;;  %v500_v8 = vpack.c.bf16 %v2245_v57, %v434_v35 }
  0xc2   : > { %v2278_v28 = vpack.c.bf16 %v2271_v26, %v2259_v12  ;;  %1345 = vmatpush.bf16.msra.mxu2 %v1910_v11  ;;  %v1882_v57 = vld [vmem:[#allocation3 + $0x148] sm:$0xff] }
  0xc3   : > { %1124 = vmatmul.bf16.gmra.mxu2 %v2274_v27 }
  0xc4   : > { %1182 = vmatmul.bf16.gmra.mxu0 %v2278_v28  ;;  %v338_v32 = vpop.f32.mrf.mxu0 }
  0xc5   : > { %v385_v33 = vadd.f32 %v2242_v52, %v338_v32 }
  0xc6   : > { %1346 = vmatpush.bf16.msra.mxu2 %v1909_v17 }
  0xc7   : > { %v2283_v37 = vmax.f32 %v385_v33, 0.0  ;;  %v1906_v33 = vld [vmem:[#allocation3 + $0x208] sm:$0xff] }
  0xc8   : > { %v453_v38 = vld [vmem:[#allocation2 + $0x40] sm:$0xff] }
  0xc9   : > { %v2285_v39 = vld [vmem:[#allocation2 + $0x42] sm:$0xff]  ;;  %422 = vst [vmem:[#allocation2 + $0x51] sm:$0xff] %v2283_v37  ;;  %v511_v40 = vpack.c.bf16 %v453_v38, %v429_v25  ;;  %v2290_v42 = vpack.c.bf16 %v2283_v37, %v2269_v21  ;;  %v1908_v25 = vld [vmem:[#allocation3 + $0x218] sm:$0xff] }
  0xca   : > { %v513_v43 = vpack.c.bf16 %v2285_v39, %v2271_v26  ;;  %1347 = vmatpush.bf16.msra.mxu2 %v1908_v25 }
  0xcb   : > { %1211 = vmatmul.bf16.gmra.mxu1 %v511_v40 }
  0xcc   : > { %v340_v46 = vpop.f32.mrf.mxu0 }
  0xcd   : > { %v386_v47 = vadd.f32 %v2242_v52, %v340_v46 }
  0xce   : > { %1348 = vmatpush.bf16.msra.mxu2 %v1907_v29 }
  0xcf   : > { %v2295_v51 = vmax.f32 %v386_v47, 0.0 }
  0xd0   : > { %v431_v53 = vld [vmem:[#allocation2 + $0x50] sm:$0xff] }
  0xd1   : > { %v2297_v54 = vld [vmem:[#allocation2 + $0x52] sm:$0xff]  ;;  %423 = vst [vmem:[#allocation2 + $0x61] sm:$0xff] %v2295_v51  ;;  %v2300_v55 = vpack.c.bf16 %v431_v53, %v453_v38  ;;  %v521_v21 = vpack.c.bf16 %v2295_v51, %v2283_v37 }
  0xd2   : > { %v2304_v56 = vpack.c.bf16 %v2297_v54, %v2285_v39  ;;  %1349 = vmatpush.bf16.msra.mxu2 %v1906_v33  ;;  %v1883_v38 = vld [vmem:[#allocation3 + $0x150] sm:$0xff] }
  0xd3   : > { %1129 = vmatmul.bf16.vlgmr.msra.gmra.mxu3 %v2300_v55  ;;  %1235 = vmatmul.bf16.vlgmr.msrb.gmra.mxu2 %v503_v58 }
  0xd4   : > { %1187 = vmatmul.bf16.gmra.mxu0 %v2304_v56  ;;  %v343_v61 = vpop.f32.mrf.mxu0  ;;  %1256 = vmatpush.bf16.msra.mxu3 %v1888_v62 }
  0xd5   : > { %v387_v0 = vadd.f32 %v2242_v52, %v343_v61 }
  0xd6   : > { %1350 = vmatpush.bf16.msra.mxu2 %v1905_v34 }
  0xd7   : > { %v395_v5 = vmax.f32 %v387_v0, 0.0 }
  0xd8   : > { %v455_v63 = vld [vmem:[#allocation2 + $0x60] sm:$0xff]  ;;  %1257 = vmatpush.bf16.msra.mxu3 %v1887_v4 }
  0xd9   : > { %v2311_v6 = vld [vmem:[#allocation2 + $0x62] sm:$0xff]  ;;  %424 = vst [vmem:[#allocation2 + $0x71] sm:$0xff] %v395_v5  ;;  %v520_v7 = vpack.c.bf16 %v455_v63, %v431_v53  ;;  %v2314_v9 = vpack.c.bf16 %v395_v5, %v2295_v51 }
  0xda   : > { %v522_v10 = vpack.c.bf16 %v2311_v6, %v2297_v54 }
  0xdb   : > { %1216 = vmatmul.bf16.gmra.mxu1 %v520_v7 }
  0xdc   : > { %v345_v13 = vpop.f32.mrf.mxu0 }
  0xdd   : > { %v388_v14 = vadd.f32 %v2242_v52, %v345_v13  ;;  %v1886_v52 = vld [vmem:[#allocation3 + $0x168] sm:$0xff] }
  0xde   : > { %1258 = vmatpush.bf16.msra.mxu3 %v1886_v52 }
  0xdf   : > { %v396_v18 = vmax.f32 %v388_v14, 0.0 }
  0xe0   : > { %v433_v19 = vld [vmem:[#allocation2 + $0x70] sm:$0xff] }
  0xe1   : > { %v2319_v20 = vld [vmem:[#allocation2 + $0x72] sm:$0xff]  ;;  %425 = vst [vmem:[#allocation2 + $0x81] sm:$0xff] %v396_v18  ;;  %v526_v22 = vpack.c.bf16 %v433_v19, %v455_v63  ;;  %v530_v40 = vpack.c.bf16 %v396_v18, %v395_v5  ;;  %v533_v46 = vpack.c.bf16 %v490_v45, %v396_v18 }
  0xe2   : > { %v528_v23 = vpack.c.bf16 %v2319_v20, %v2311_v6  ;;  %1259 = vmatpush.bf16.msra.mxu3 %v1885_v30 }
  0xe3   : > { %1134 = vmatmul.bf16.gmra.mxu3 %v526_v22  ;;  %1240 = vmatmul.bf16.gmra.mxu2 %v512_v24 }
  0xe4   : > { %1192 = vmatmul.bf16.gmra.mxu0 %v528_v23 }
  0xe6   : > { %1260 = vmatpush.bf16.msra.mxu3 %v1884_v36 }
  0xe8   : > { %v457_v31 = vld [vmem:[#allocation2 + $0x80] sm:$0xff] }
  0xe9   : > { %v529_v32 = vpack.c.bf16 %v457_v31, %v433_v19  ;;  %v532_v44 = vpack.c.bf16 0.0, %v457_v31  ;;  %v497_v49 = vld [vmem:[#allocation2 + $0x82] sm:$0xff] }
  0xea   : > { %1261 = vmatpush.bf16.msra.mxu3 %v1883_v38  ;;  %v534_v53 = vpack.c.bf16 %v498_v50, %v497_v49  ;;  %v531_v26 = vpack.c.bf16 %v497_v49, %v2319_v20 }
  0xeb   : > { %1221 = vmatmul.bf16.gmra.mxu1 %v529_v32 }
  0xee   : > { %1262 = vmatpush.bf16.msra.mxu3 %v1882_v57 }
  0xf2   : > { %1263 = vmatpush.bf16.msra.mxu3 %v1881_v41 }
  0xf3   : > { %1148 = vmatmul.bf16.vlgmr.msrb.gmra.mxu3 %v500_v8  ;;  %1245 = vmatmul.bf16.gmra.mxu2 %v521_v21 }
  0xf4   : > { %1293 = vmatmul.bf16.vlgmr.msra.gmra.mxu0 %v2274_v27  ;;  %v2333_v27 = vpop.f32.mrf.mxu1 }
  0xfb   : > { %1322 = vmatmul.bf16.vlgmr.msra.gmra.mxu1 %v2264_v15 }
  0xfc   : > { %v2337_v37 = vpop.f32.mrf.mxu1 }
 0x103   : > { %1153 = vmatmul.bf16.gmra.mxu3 %v2264_v15  ;;  %1250 = vmatmul.bf16.gmra.mxu2 %v530_v40 }
 0x104   : > { %1298 = vmatmul.bf16.gmra.mxu0 %v2300_v55  ;;  %v2340_v15 = vpop.f32.mrf.mxu1 }
 0x10b   : > { %1327 = vmatmul.bf16.gmra.mxu1 %v2290_v42 }
 0x10c   : > { %v2344_v47 = vpop.f32.mrf.mxu1 }
 0x113   : > { %1158 = vmatmul.bf16.gmra.mxu3 %v2290_v42  ;;  %1351 = vmatmul.bf16.vlgmr.msra.gmra.mxu2 %v2278_v28 }
 0x114   : > { %1303 = vmatmul.bf16.gmra.mxu0 %v526_v22  ;;  %v2349_v28 = vpop.f32.mrf.mxu1 }
 0x11b   : > { %1332 = vmatmul.bf16.gmra.mxu1 %v2314_v9 }
 0x11c   : > { %v2351_v48 = vpop.f32.mrf.mxu1 }
 0x123   : > { %1163 = vmatmul.bf16.gmra.mxu3 %v2314_v9  ;;  %1356 = vmatmul.bf16.gmra.mxu2 %v2304_v56 }
 0x124   : > { %1308 = vmatmul.bf16.gmra.mxu0 %v532_v44  ;;  %v2356_v55 = vpop.f32.mrf.mxu1 }
 0x12b   : > { %1337 = vmatmul.bf16.gmra.mxu1 %v533_v46 }
 0x12c   : > { %v374_v1 = vpop.f32.mrf.mxu1 }
 0x131   : > { %v1178_v58 = vpop.f32.mrf.mxu0 }
 0x133   : > { %1264 = vmatmul.bf16.vlgmr.msra.gmra.mxu3 %v504_v16  ;;  %1361 = vmatmul.bf16.gmra.mxu2 %v528_v23 }
 0x136   : > { %v1120_v42 = vpop.f32.mrf.mxu2 }
 0x137   : > { %v1121_v34 = vadd.f32 %v1120_v42, %v2333_v27 }
 0x138   : > { %v1207_v59 = vpop.f32.mrf.mxu1 }
 0x139   : > { %v1180_v39 = vpop.f32.mrf.mxu0 }
 0x13e   : > { %v1122_v51 = vpop.f32.mrf.mxu2 }
 0x13f   : > { %v1123_v57 = vadd.f32 %v1122_v51, %v2337_v37  ;;  %v2417_v37 = vld [vmem:[%s2505_s4] ss:$0 sm:$0xff] }
 0x141   : > { %v1183_v2 = vpop.f32.mrf.mxu0 }
 0x143   : > { %1269 = vmatmul.bf16.gmra.mxu3 %v513_v43  ;;  %1366 = vmatmul.bf16.gmra.mxu2 %v534_v53  ;;  %v1209_v43 = vpop.f32.mrf.mxu1 }
 0x146   : > { %v1125_v56 = vpop.f32.mrf.mxu2 }
 0x147   : > { %v1126_v27 = vadd.f32 %v1125_v56, %v2340_v15 }
 0x149   : > { %v2374_v6 = vpop.f32.mrf.mxu0 }
 0x14b   : > { %v1212_v4 = vpop.f32.mrf.mxu1 }
 0x14e   : > { %v2361_v12 = vpop.f32.mrf.mxu2 }
 0x14f   : > { %v1128_v15 = vadd.f32 %v2361_v12, %v2344_v47 }
 0x151   : > { %v2380_v11 = vpop.f32.mrf.mxu0 }
 0x153   : > { %1274 = vmatmul.bf16.gmra.mxu3 %v522_v10  ;;  %v2376_v7 = vpop.f32.mrf.mxu1 }
 0x156   : > { %v2363_v16 = vpop.f32.mrf.mxu3  ;;  %v1236_v60 = vpop.f32.mrf.mxu2 }
 0x159   : > { %v2386_v18 = vpop.f32.mrf.mxu0 }
 0x15b   : > { %v2382_v13 = vpop.f32.mrf.mxu1 }
 0x15e   : > { %v2365_v61 = vpop.f32.mrf.mxu3  ;;  %v1238_v0 = vpop.f32.mrf.mxu2 }
 0x161   : > { %v2392_v23 = vpop.f32.mrf.mxu0 }
 0x163   : > { %1279 = vmatmul.bf16.gmra.mxu3 %v531_v26  ;;  %v2388_v19 = vpop.f32.mrf.mxu1 }
 0x166   : > { %v2368_v62 = vpop.f32.mrf.mxu3  ;;  %v2372_v5 = vpop.f32.mrf.mxu2 }
 0x169   : > { %v2400_v30 = vpop.f32.mrf.mxu0 }
 0x16b   : > { %v2394_v25 = vpop.f32.mrf.mxu1 }
 0x16e   : > { %v1137_v54 = vpop.f32.mrf.mxu3  ;;  %v2378_v9 = vpop.f32.mrf.mxu2 }
 0x16f   : > { %v2370_v3 = vadd.f32 %v1137_v54, %v374_v1 }
 0x171   : > { %v1294_v8 = vpop.f32.mrf.mxu0 }
 0x173   : > { %v2402_v31 = vpop.f32.mrf.mxu1 }
 0x176   : > { %v1149_v63 = vpop.f32.mrf.mxu3  ;;  %v2384_v14 = vpop.f32.mrf.mxu2 }
 0x177   : > { %v1150_v35 = vadd.f32 %v1149_v63, %v1121_v34 }
 0x179   : > { %v1179_v36 = vadd.f32 %v1178_v58, %v1150_v35  ;;  %v1296_v45 = vpop.f32.mrf.mxu0 }
 0x17b   : > { %v1323_v21 = vpop.f32.mrf.mxu1  ;;  %v1208_v44 = vadd.f32 %v1207_v59, %v1179_v36 }
 0x17d   : > { %v1237_v49 = vadd.f32 %v1236_v60, %v1208_v44 }
 0x17e   : > { %v1151_v10 = vpop.f32.mrf.mxu3  ;;  %v2390_v22 = vpop.f32.mrf.mxu2 }
 0x17f   : > { %v1152_v41 = vadd.f32 %v1151_v10, %v1123_v57  ;;  %v1131_v57 = vadd.f32 %v2363_v16, %v2349_v28  ;;  %v1133_v16 = vadd.f32 %v2365_v61, %v2351_v48 }
 0x181   : > { %v1181_v46 = vadd.f32 %v1180_v39, %v1152_v41  ;;  %v1299_v39 = vpop.f32.mrf.mxu0 }
 0x183   : > { %v1325_v50 = vpop.f32.mrf.mxu1  ;;  %v1210_v54 = vadd.f32 %v1209_v43, %v1181_v46 }
 0x185   : > { %v1239_v60 = vadd.f32 %v1238_v0, %v1210_v54 }
 0x186   : > { %v1154_v17 = vpop.f32.mrf.mxu3  ;;  %v2396_v52 = vpop.f32.mrf.mxu2 }
 0x187   : > { %v1155_v26 = vadd.f32 %v1154_v17, %v1126_v27 }
 0x189   : > { %v1184_v51 = vadd.f32 %v1183_v2, %v1155_v26 }
 0x18b   : > { %v1328_v17 = vpop.f32.mrf.mxu1 }
 0x18e   : > { %v1156_v20 = vpop.f32.mrf.mxu3  ;;  %v2404_v32 = vpop.f32.mrf.mxu2 }
 0x18f   : > { %v1157_v34 = vadd.f32 %v1156_v20, %v1128_v15 }
 0x191   : > { %v1186_v2 = vadd.f32 %v2374_v6, %v1157_v34 }
 0x196   : > { %v1159_v24 = vpop.f32.mrf.mxu3  ;;  %v1352_v38 = vpop.f32.mrf.mxu2 }
 0x197   : > { %v1160_v44 = vadd.f32 %v1159_v24, %v1131_v57 }
 0x19e   : > { %v2398_v29 = vpop.f32.mrf.mxu3  ;;  %v1354_v1 = vpop.f32.mrf.mxu2 }
 0x19f   : > { %v1162_v26 = vadd.f32 %v2398_v29, %v1133_v16 }
 0x1a6   : > { %v2406_v33 = vpop.f32.mrf.mxu3  ;;  %v1357_v36 = vpop.f32.mrf.mxu2 }
 0x1ae   : > { %v2409_v40 = vpop.f32.mrf.mxu3 }
 0x1b6   : > { %v1265_v53 = vpop.f32.mrf.mxu3 }
 0x1b7   : > { %v1266_v42 = vadd.f32 %v1265_v53, %v1237_v49  ;;  %v1215_v49 = vadd.f32 %v2376_v7, %v1186_v2  ;;  %v1330_v53 = vpop.f32.mrf.mxu1 }
 0x1b9   : > { %v1295_v58 = vadd.f32 %v1294_v8, %v1266_v42  ;;  %v1244_v42 = vadd.f32 %v2378_v9, %v1215_v49  ;;  %v1191_v9 = vadd.f32 %v2386_v18, %v1162_v26 }
 0x1bb   : > { %v1324_v63 = vadd.f32 %v1323_v21, %v1295_v58  ;;  %v1213_v21 = vadd.f32 %v1212_v4, %v1184_v51  ;;  %v1301_v4 = vpop.f32.mrf.mxu0 }
 0x1bd   : > { %v1353_v59 = vadd.f32 %v1352_v38, %v1324_v63  ;;  %v1242_v47 = vadd.f32 %v2372_v5, %v1213_v21  ;;  %v1189_v5 = vadd.f32 %v2380_v11, %v1160_v44 }
 0x1be   : > { %v1267_v10 = vpop.f32.mrf.mxu3 }
 0x1bf   : > { %v1376_v56 = vadd.f32 %v2417_v37, %v1353_v59  ;;  %v1268_v43 = vadd.f32 %v1267_v10, %v1239_v60  ;;  %v1218_v54 = vadd.f32 %v2382_v13, %v1189_v5  ;;  %v1333_v51 = vpop.f32.mrf.mxu1 }
 0x1c1   : > { %v1384_v35 = vmax.f32 %v1376_v56, 0.0  ;;  %v1297_v8 = vadd.f32 %v1296_v45, %v1268_v43  ;;  %v1247_v60 = vadd.f32 %v2384_v14, %v1218_v54  ;;  %v1220_v43 = vadd.f32 %v2388_v19, %v1191_v9 }
 0x1c3   : > { %1392 = vst [vmem:[%s2424_s9] sm:$0xff] %v1384_v35  ;;  %v1326_v0 = vadd.f32 %v1325_v50, %v1297_v8  ;;  %v1359_v50 = vpop.f32.mrf.mxu2  ;;  %v1304_v63 = vpop.f32.mrf.mxu0  ;;  %v1249_v35 = vadd.f32 %v2390_v22, %v1220_v43 }
 0x1c5   : > { %v1355_v38 = vadd.f32 %v1354_v1, %v1326_v0 }
 0x1c6   : > { %v1270_v12 = vpop.f32.mrf.mxu3 }
 0x1c7   : > { %v1377_v20 = vadd.f32 %v2417_v37, %v1355_v38  ;;  %v1271_v41 = vadd.f32 %v1270_v12, %v1242_v47  ;;  %v1335_v8 = vpop.f32.mrf.mxu1 }
 0x1c9   : > { %v1385_v45 = vmax.f32 %v1377_v20, 0.0  ;;  %v1300_v46 = vadd.f32 %v1299_v39, %v1271_v41  ;;  %v1136_v39 = vadd.f32 %v2368_v62, %v2356_v55 }
 0x1cb   : > { %1393 = vst [vmem:[%s2424_s9 + $0x8] sm:$0xff] %v1385_v45  ;;  %v1329_v6 = vadd.f32 %v1328_v17, %v1300_v46  ;;  %v1362_v48 = vpop.f32.mrf.mxu2  ;;  %v1165_v13 = vadd.f32 %v2406_v33, %v1136_v39  ;;  %v1306_v17 = vpop.f32.mrf.mxu0  ;;  %v1167_v33 = vadd.f32 %v2409_v40, %v2370_v3 }
 0x1cd   : > { %v1358_v27 = vadd.f32 %v1357_v36, %v1329_v6  ;;  %v1194_v14 = vadd.f32 %v2392_v23, %v1165_v13  ;;  %v1196_v23 = vadd.f32 %v2400_v30, %v1167_v33 }
 0x1ce   : > { %v1272_v28 = vpop.f32.mrf.mxu3 }
 0x1cf   : > { %v1378_v24 = vadd.f32 %v2417_v37, %v1358_v27  ;;  %v1273_v1 = vadd.f32 %v1272_v28, %v1244_v42  ;;  %v1223_v2 = vadd.f32 %v2394_v25, %v1194_v14  ;;  %v1225_v44 = vadd.f32 %v2402_v31, %v1196_v23 }
 0x1d1   : > { %v1386_v7 = vmax.f32 %v1378_v24, 0.0  ;;  %v1302_v58 = vadd.f32 %v1301_v4, %v1273_v1  ;;  %v1252_v22 = vadd.f32 %v2396_v52, %v1223_v2  ;;  %v1338_v4 = vpop.f32.mrf.mxu1  ;;  %v1254_v46 = vadd.f32 %v2404_v32, %v1225_v44 }
 0x1d3   : > { %1394 = vst [vmem:[%s2424_s9 + $0x10] sm:$0xff] %v1386_v7  ;;  %v1331_v11 = vadd.f32 %v1330_v53, %v1302_v58  ;;  %v1364_v36 = vpop.f32.mrf.mxu2  ;;  %v1309_v12 = vpop.f32.mrf.mxu0 }
 0x1d5   : > { %v1360_v59 = vadd.f32 %v1359_v50, %v1331_v11 }
 0x1d6   : > { %v1275_v61 = vpop.f32.mrf.mxu3 }
 0x1d7   : > { %v1379_v29 = vadd.f32 %v2417_v37, %v1360_v59  ;;  %v1276_v10 = vadd.f32 %v1275_v61, %v1247_v60 }
 0x1d9   : > { %v1387_v15 = vmax.f32 %v1379_v29, 0.0  ;;  %v1305_v56 = vadd.f32 %v1304_v63, %v1276_v10  ;;  %v1340_v27 = vpop.f32.mrf.mxu1 }
 0x1db   : > { %1395 = vst [vmem:[%s2424_s9 + $0x18] sm:$0xff] %v1387_v15  ;;  %v1334_v18 = vadd.f32 %v1333_v51, %v1305_v56  ;;  %v1367_v25 = vpop.f32.mrf.mxu2  ;;  %v1311_v6 = vpop.f32.mrf.mxu0 }
 0x1dd   : > { %v1363_v34 = vadd.f32 %v1362_v48, %v1334_v18 }
 0x1de   : > { %v1277_v55 = vpop.f32.mrf.mxu3 }
 0x1df   : > { %v1380_v62 = vadd.f32 %v2417_v37, %v1363_v34  ;;  %v1278_v21 = vadd.f32 %v1277_v55, %v1249_v35 }
 0x1e1   : > { %v1388_v0 = vmax.f32 %v1380_v62, 0.0  ;;  %v1307_v19 = vadd.f32 %v1306_v17, %v1278_v21 }
 0x1e3   : > { %1396 = vst [vmem:[%s2424_s9 + $0x20] sm:$0xff] %v1388_v0  ;;  %v1336_v38 = vadd.f32 %v1335_v8, %v1307_v19  ;;  %v1369_v42 = vpop.f32.mrf.mxu2 }
 0x1e5   : > { %v1365_v47 = vadd.f32 %v1364_v36, %v1336_v38 }
 0x1e6   : > { %v1280_v57 = vpop.f32.mrf.mxu3 }
 0x1e7   : > { %v1381_v20 = vadd.f32 %v2417_v37, %v1365_v47  ;;  %v1281_v41 = vadd.f32 %v1280_v57, %v1252_v22 }
 0x1e9   : > { %v1389_v3 = vmax.f32 %v1381_v20, 0.0  ;;  %v1310_v40 = vadd.f32 %v1309_v12, %v1281_v41 }
 0x1eb   : > { %1397 = vst [vmem:[%s2424_s9 + $0x28] sm:$0xff] %v1389_v3  ;;  %v1339_v45 = vadd.f32 %v1338_v4, %v1310_v40 }
 0x1ed   : > { %v1368_v30 = vadd.f32 %v1367_v25, %v1339_v45 }
 0x1ee   : > { %v1282_v52 = vpop.f32.mrf.mxu3 }
 0x1ef   : > { %v1382_v49 = vadd.f32 %v2417_v37, %v1368_v30  ;;  %v1283_v53 = vadd.f32 %v1282_v52, %v1254_v46 }
 0x1f1   : > { %v1390_v50 = vmax.f32 %v1382_v49, 0.0  ;;  %v1312_v5 = vadd.f32 %v1311_v6, %v1283_v53 }
 0x1f3   : > { %1398 = vst [vmem:[%s2424_s9 + $0x30] sm:$0xff] %v1390_v50  ;;  %v1341_v31 = vadd.f32 %v1340_v27, %v1312_v5 }
 0x1f5   : > { %v1370_v32 = vadd.f32 %v1369_v42, %v1341_v31 }
 0x1f7   : > { %v1383_v28 = vadd.f32 %v2417_v37, %v1370_v32 }
 0x1f9   : > { %v1391_v16 = vmax.f32 %v1383_v28, 0.0 }
 0x1fb   : > { %1399 = vst [vmem:[%s2424_s9 + $0x38] sm:$0xff] %v1391_v16 }
 0x1fc   : > { %2036 = shalt.err (!%p2033_p8)
}
 0x1fd   : > { %s2081_s30 = smov 128   ;;  %s2082_s8 = smov 8  }
 0x1fe   : > { %1926 = dma.vmem_to_hbm [thread:$0]  (%p2151_p5), %s1414_s14, 1024, %s1416_s15, %s1401_s22, %s2081_s30, %s2081_s30, %s2082_s8  }
 0x1ff PF: > { %p1938_p9 = scmp.ge.s32.totalorder %s2075_s21, 2  ;;  %s1430_s9 = sand.u32 1, %s2063_s18  }
 0x200   : > { %s1431_s10 = scalar_lea.sflag [#allocation5], %s1430_s9 }
 0x201   : > { %p1933_p10 = pnand %p1938_p9, %p2155_p6 }
 0x203   : > { %p1934_p11 = pneg %p1933_p10 }
 0x205   : > { %2058 = dma.done.wait (%p1934_p11), %s1431_s10, 1024  }
 0x206   : > { %2060 = vsyncadd (%p1934_p11), %s1431_s10, 4294966272  ;;  %p16_p12 = scmp.ge.s32.totalorder %s2138_s24, 4   ;;  %s2509_s18 = smov %s2067_s19 }
 0x207   : > { %s2510_s19 = smov %s2071_s20  ;;  %s2511_s20 = smov %s2149_s27 }
 0x208   : > { %s2512_s21 = smov %s2138_s24  ;;  %18 = sbr.rel (!%p16_p12) target bundleno = 4 (0x4), region = 82 }
 0x20d   :  { %1437 = vsyncpa [#allocation4], 1 }
 0x20e   :  { %1439 = vsyncpa [#allocation4 + $0x1], 1 }
 0x20f   :  { %1440 = vsyncpa [#allocation5], 1 }
 0x210   :  { %1442 = vsyncpa [#allocation5 + $0x1], 1 }

// kernel: tpu_custom_call.1
= control target key start
LH: loop header
LB: loop body
LE: loop exit
PB: predicated region body
PF: predicated region fallthrough
CT: control target
= control target key end

     0   :  { %10 = vsyncpa [#allocation4], 0  ;;  %s2501_s0 = inlined_call_operand.vmem [shape: bf16[2,64,36], index: 0, kind: input, shape index: {}]   ;;  %s2502_s1 = inlined_call_operand.vmem [shape: bf16[36,256], index: 1, kind: input, shape index: {}]   ;;  %s2503_s2 = inlined_call_operand.vmem [shape: f32[1,128], index: 2, kind: input, shape index: {}]   ;;  %s2504_s3 = inlined_call_operand.hbm [shape: bf16[1152,128], index: 3, kind: input, shape index: {}]   ;;  %s2505_s4 = inlined_call_operand.vmem [shape: f32[1,128], index: 4, kind: input, shape index: {}]   ;;  %s2506_s5 = inlined_call_operand.hbm [shape: f32[2,64,128], index: 5, kind: output, shape index: {}]  }
   0x1   :  { %11 = vsyncpa [#allocation5], 0 }
   0x2   :  { %13 = vsyncpa [#allocation5 + $0x1], 0  ;;  %s2113_s18 = smov 0   ;;  %s2115_s19 = smov 0  }
   0x3   :  { %s2117_s20 = smov 0   ;;  %s2119_s21 = smov 0  }
   0x4 LB: > { %s2134_s22 = sadd.s32 4294967295, %s2075_s21   ;;  %s1490_s23 = sadd.s32 4294967294, %s2075_s21   ;;  %s2075_s21 = sphi %s2119_s21, %s2512_s21   ;;  %s2071_s20 = sphi %s2117_s20, %s2511_s20   ;;  %s2067_s19 = sphi %s2115_s19, %s2510_s19   ;;  %s2063_s18 = sphi %s2113_s18, %s2509_s18  }
   0x5   : > { %s2138_s24 = sadd.s32 1, %s2075_s21   ;;  %s136_s25 = sadd.s32 1, %s2071_s20 }
   0x6   : > { %s133_s26 = ssub.s32 %s2075_s21, %s2138_s24  ;;  %p146_p0 = scmp.ne.s32.totalorder %s2071_s20, %s2067_s19 }
   0x7   : > { %p134_p1 = scmp.eq.s32.totalorder %s133_s26, 0  ;;  %p147_p2 = scmp.eq.s32.totalorder %s2134_s22, 1 }
   0x8   : > { %p152_p3 = scmp.ne.s32.totalorder %s2067_s19, %s2063_s18  ;;  %p153_p4 = scmp.eq.s32.totalorder %s1490_s23, 1 }
   0x9   : > { %s2149_s27 = scalar_select %p134_p1, %s2071_s20, %s136_s25  }
   0xa   : > { %p2151_p5 = por %p147_p2, %p146_p0  ;;  %p2155_p6 = por %p153_p4, %p152_p3 }
   0xb   : > { %p1491_p7 = scmp.ge.s32.totalorder %s2075_s21, 1  ;;  %p160_p8 = scmp.lt.s32.totalorder %s2075_s21, 3 }
   0xc   : > { %p1936_p9 = scmp.eq.s32.totalorder %s2134_s22, 0  ;;  %s177_s7 = sshll.u32 %s2504_s3, 4  ;;  %s178_s7 = int_to_ptr.hbm [resolvable:$true] %s177_s7 }
   0xd   : > { %p161_p10 = pnand %p1491_p7, %p160_p8  ;;  %s2077_s8 = smov [#allocation3]  }
   0xe   : > { %s179_s9 = sshll.u32 %s2077_s8, 4  ;;  %s2078_s10 = smov 64   ;;  %s180_s9 = int_to_ptr.vmem [resolvable:$true] %s179_s9 }
   0xf   : > { %p1928_p11 = pneg %p161_p10  ;;  %s2079_s11 = smov 4  }
  0x10   : > { %206 = sbr.rel (%p161_p10) target bundleno = 511 (0x1ff), region = 40 }
  0x11   : > { %p1929_p12 = pnand %p1936_p9, %p1928_p11 }
  0x13   : > { %1931 = dma.hbm_to_vmem [thread:$0]  (!%p1929_p12), %s178_s7, 9216, %s180_s9, [#allocation4], %s2078_s10, %s2078_s10, %s2079_s11  }
  0x15   : > { %2054 = dma.done.wait (%p1936_p9), [#allocation4], 9216  }
  0x16   : > { %2056 = vsyncadd (%p1936_p9), [#allocation4], 4294958080  ;;  %p235_p13 = scmp.lt.s32.totalorder %s2134_s22, 1  ;;  %v253_v0 = vld [vmem:[%s2502_s1 + $0x20] sm:$0x33]  ;;  %vm312_vm0 = vcmask 1041408  }
  0x17   : > { %v287_v1 = vunpack.c.l.b16 %v253_v0  ;;  %v1525_v3 = vld [vmem:[%s2502_s1 + $0x10] sm:$0xf]  ;;  %v1840_v4 = vld [vmem:[%s2502_s1 + $0x14] sm:$0xf0]  ;;  %v1517_v7 = vld [vmem:[%s2502_s1] sm:$0xf]  ;;  %v288_v12 = vunpack.c.h.b16 %v253_v0 }
  0x18   : > { %s236_s14 = scalar_select %p235_p13, %s2134_s22, 1  ;;  %v1526_v6 = vor.u32 %v1840_v4, %v1525_v3  ;;  %v1838_v8 = vld [vmem:[%s2502_s1 + $0x4] sm:$0xf0]  ;;  %vm299_vm1 = vcmask 293888   ;;  %v1848_v13 = vld [vmem:[#allocation3 + $0x38] sm:$0xff]  ;;  %v1847_v18 = vld [vmem:[#allocation3 + $0x30] sm:$0xff] }
  0x19   : > { %v293_v2 = vpack.c.b16 %v287_v1, %v287_v1  ;;  %v1518_v9 = vor.u32 %v1838_v8, %v1517_v7  ;;  %v1864_v14 = vld [vmem:[#allocation3 + $0xb8] sm:$0xff]  ;;  %v294_v15 = vpack.c.b16 %v288_v12, %v288_v12  ;;  %v1839_v16 = vld [vmem:[%s2502_s1 + $0x14] sm:$0xf]  ;;  %1111 = vmatpush.bf16.msra.mxu2 %v1848_v13  ;;  %1914 = vmatpush.bf16.msra.mxu3 %v1848_v13  ;;  %v1837_v22 = vld [vmem:[%s2502_s1 + $0x4] sm:$0xf]  ;;  %v2080_v33 = vmov 0.0  }
  0x1a   : > { %s1832_s7 = sshll.u32 %s236_s14, 5  ;;  %v1527_v17 = vld [vmem:[%s2502_s1 + $0x18] sm:$0xf0]  ;;  %v1863_v19 = vld [vmem:[#allocation3 + $0xb0] sm:$0xff]  ;;  %v1519_v23 = vld [vmem:[%s2502_s1 + $0x8] sm:$0xf0] }
  0x1b   : > { %v314_v5 = vsel %vm312_vm0, %v293_v2, 0  ;;  %s2192_s10 = scalar_lea.vmem %s2501_s0, %s1832_s7  ;;  %v317_v20 = vsel %vm312_vm0, %v294_v15, 0  ;;  %v1530_v21 = vor.u32 %v1839_v16, %v1527_v17  ;;  %v1522_v24 = vor.u32 %v1837_v22, %v1519_v23  ;;  %v1846_v26 = vld [vmem:[#allocation3 + $0x28] sm:$0xff]  ;;  %v1872_v28 = vld [vmem:[#allocation3 + $0xf8] sm:$0xff]  ;;  %v1845_v29 = vld [vmem:[#allocation3 + $0x20] sm:$0xff]  ;;  %399 = vst [vmem:[#allocation2 + $0x10] sm:$0xff] %v2080_v33 }
  0x1c   : > { %324 = vmatpush.bf16.msra.mxu0 %v314_v5  ;;  %v1833_v10 = vld [vmem:[%s2192_s10] sm:$0xff]  ;;  %v1834_v11 = vld [vmem:[%s2192_s10 + $0x8] sm:$0xff]  ;;  %353 = vmatpush.bf16.msra.mxu1 %v317_v20  ;;  %v1835_v25 = vld [vmem:[%s2192_s10 + $0x10] sm:$0xff]  ;;  %400 = vst [vmem:[#allocation2 + $0x18] sm:$0x3] %v2080_v33  ;;  %s232_s30 = sand.u32 1, %s2067_s19  }
  0x1d   : > { %1112 = vmatpush.bf16.msra.mxu2 %v1847_v18  ;;  %1915 = vmatpush.bf16.msra.mxu3 %v1847_v18  ;;  %v1862_v27 = vld [vmem:[#allocation3 + $0xa8] sm:$0xff]  ;;  %v1861_v30 = vld [vmem:[#allocation3 + $0xa0] sm:$0xff]  ;;  %v1871_v31 = vld [vmem:[#allocation3 + $0xf0] sm:$0xff]  ;;  %397 = vst [vmem:[#allocation2] sm:$0xff] %v2080_v33  ;;  %s1496_s8 = sshll.u32 %s232_s30, 6  ;;  %s2029_s26 = scalar_lea.hbm %s2506_s5, 128 }
  0x1e   : > { %v1836_v32 = vld [vmem:[%s2192_s10 + $0x18] sm:$0xff]  ;;  %v1870_v36 = vld [vmem:[#allocation3 + $0xe8] sm:$0xff]  ;;  %398 = vst [vmem:[#allocation2 + $0x8] sm:$0x3] %v2080_v33  ;;  %v1843_v37 = vld [vmem:[#allocation3 + $0x10] sm:$0xff]  ;;  %s2424_s9 = scalar_lea.vmem [#allocation6], %s1496_s8 }
  0x1f   : > { %v1844_v34 = vld [vmem:[#allocation3 + $0x18] sm:$0xff]  ;;  %401 = vst [vmem:[#allocation2 + $0x20] sm:$0xff] %v2080_v33  ;;  %v1859_v38 = vld [vmem:[#allocation3 + $0x90] sm:$0xff]  ;;  %v1869_v39 = vld [vmem:[#allocation3 + $0xe0] sm:$0xff]  ;;  %s1913_s10 = sshll.u32 %s2134_s22, 6  ;;  %s1413_s14 = sshll.u32 %s2424_s9, 4  ;;  %s1414_s14 = int_to_ptr.vmem [resolvable:$true] %s1413_s14 }
  0x20   : > { %325 = vmatpush.bf16.msra.mxu0 %v1526_v6  ;;  %354 = vmatpush.bf16.msra.mxu1 %v1530_v21  ;;  %v1860_v35 = vld [vmem:[#allocation3 + $0x98] sm:$0xff]  ;;  %402 = vst [vmem:[#allocation2 + $0x28] sm:$0x3] %v2080_v33  ;;  %v1842_v40 = vld [vmem:[#allocation3 + $0x8] sm:$0xff]  ;;  %v1841_v43 = vld [vmem:[#allocation3] sm:$0xff]  ;;  %s1412_s13 = scalar_lea.hbm %s2506_s5, %s1913_s10  ;;  %s1401_s22 = scalar_lea.sflag [#allocation5], %s232_s30 }
  0x21   : > { %1113 = vmatpush.bf16.msra.mxu2 %v1846_v26  ;;  %1916 = vmatpush.bf16.msra.mxu3 %v1846_v26  ;;  %403 = vst [vmem:[#allocation2 + $0x30] sm:$0xff] %v2080_v33  ;;  %v1858_v41 = vld [vmem:[#allocation3 + $0x88] sm:$0xff]  ;;  %v1868_v42 = vld [vmem:[#allocation3 + $0xd8] sm:$0xff]  ;;  %v1857_v44 = vld [vmem:[#allocation3 + $0x80] sm:$0xff]  ;;  %s1415_s15 = sshll.u32 %s1412_s13, 4  ;;  %s1416_s15 = int_to_ptr.hbm [resolvable:$true] %s1415_s15 }
  0x22   : > { %404 = vst [vmem:[#allocation2 + $0x38] sm:$0x3] %v2080_v33  ;;  %v1867_v45 = vld [vmem:[#allocation3 + $0xd0] sm:$0xff]  ;;  %v1866_v46 = vld [vmem:[#allocation3 + $0xc8] sm:$0xff]  ;;  %v1880_v47 = vld [vmem:[#allocation3 + $0x138] sm:$0xff]  ;;  %s2023_s16 = sshra.s32 %s1416_s15, 4  ;;  %s2024_s16 = int_to_ptr.hbm [resolvable:$true] %s2023_s16 }
  0x23   : > { %405 = vst [vmem:[#allocation2 + $0x40] sm:$0xff] %v2080_v33  ;;  %v1865_v48 = vld [vmem:[#allocation3 + $0xc0] sm:$0xff]  ;;  %v1879_v49 = vld [vmem:[#allocation3 + $0x130] sm:$0xff]  ;;  %v1878_v50 = vld [vmem:[#allocation3 + $0x128] sm:$0xff]  ;;  %s2025_s17 = scalar_lea.hbm %s2024_s16, 64  ;;  %p2030_p3 = scmp.lt.s32.totalorder %s2024_s16, %s2506_s5 }
  0x24   : > { %326 = vmatpush.bf16.msra.mxu0 %v1518_v9  ;;  %355 = vmatpush.bf16.msra.mxu1 %v1522_v24  ;;  %406 = vst [vmem:[#allocation2 + $0x48] sm:$0x3] %v2080_v33  ;;  %v1877_v51 = vld [vmem:[#allocation3 + $0x120] sm:$0xff]  ;;  %v1876_v53 = vld [vmem:[#allocation3 + $0x118] sm:$0xff]  ;;  %v1875_v56 = vld [vmem:[#allocation3 + $0x110] sm:$0xff]  ;;  %p2026_p0 = scmp.ne.s32.totalorder %s2024_s16, %s2025_s17  ;;  %p2031_p4 = scmp.lt.s32.totalorder %s2029_s26, %s2025_s17 }
  0x25   : > { %1114 = vmatpush.bf16.msra.mxu2 %v1845_v29  ;;  %1917 = vmatpush.bf16.msra.mxu3 %v1845_v29  ;;  %407 = vst [vmem:[#allocation2 + $0x50] sm:$0xff] %v2080_v33  ;;  %v2242_v52 = vld [vmem:[%s2503_s2] ss:$0 sm:$0xff]  ;;  %v1874_v58 = vld [vmem:[#allocation3 + $0x108] sm:$0xff]  ;;  %v1856_v4 = vld [vmem:[#allocation3 + $0x78] sm:$0xff] }
  0x26   : > { %408 = vst [vmem:[#allocation2 + $0x58] sm:$0x3] %v2080_v33  ;;  %v442_v61 = vld [vmem:[#allocation2 + $0x2] sm:$0xff]  ;;  %v1896_v5 = vld [vmem:[#allocation3 + $0x1b8] sm:$0xff]  ;;  %v1855_v9 = vld [vmem:[#allocation3 + $0x70] sm:$0xff]  ;;  %p2027_p1 = pnand %p2026_p0, %p2151_p5  ;;  %p2032_p7 = por %p2031_p4, %p2030_p3 }
  0x27   : > { %1531 = vmatmul.msk.bf16.vlgmr.msra.gmra.mxu0 %vm299_vm1, %v1833_v10  ;;  %1535 = vmatmul.msk.bf16.vlgmr.msra.gmra.mxu1 %vm299_vm1, %v1833_v10  ;;  %409 = vst [vmem:[#allocation2 + $0x60] sm:$0xff] %v2080_v33  ;;  %v1873_v62 = vld [vmem:[#allocation3 + $0x100] sm:$0xff]  ;;  %v1895_v10 = vld [vmem:[#allocation3 + $0x1b0] sm:$0xff]  ;;  %v1894_v17 = vld [vmem:[#allocation3 + $0x1a8] sm:$0xff] }
  0x28   : > { %1169 = vmatpush.bf16.msrb.mxu0 %v1864_v14  ;;  %1198 = vmatpush.bf16.msrb.mxu1 %v1872_v28  ;;  %410 = vst [vmem:[#allocation2 + $0x68] sm:$0x3] %v2080_v33  ;;  %v1854_v14 = vld [vmem:[#allocation3 + $0x68] sm:$0xff]  ;;  %v1904_v18 = vld [vmem:[#allocation3 + $0x1f8] sm:$0xff]  ;;  %v1853_v22 = vld [vmem:[#allocation3 + $0x60] sm:$0xff]  ;;  %p2028_p2 = pneg %p2027_p1 }
  0x29   : > { %1115 = vmatpush.bf16.msra.mxu2 %v1844_v34  ;;  %1918 = vmatpush.bf16.msra.mxu3 %v1844_v34  ;;  %411 = vst [vmem:[#allocation2 + $0x70] sm:$0xff] %v2080_v33  ;;  %v1893_v23 = vld [vmem:[#allocation3 + $0x1a0] sm:$0xff]  ;;  %v1903_v24 = vld [vmem:[#allocation3 + $0x1f0] sm:$0xff]  ;;  %v1852_v29 = vld [vmem:[#allocation3 + $0x58] sm:$0xff] }
  0x2a   : > { %412 = vst [vmem:[#allocation2 + $0x78] sm:$0x3] %v2080_v33  ;;  %v1851_v34 = vld [vmem:[#allocation3 + $0x50] sm:$0xff]  ;;  %p2033_p8 = pnand %p2032_p7, %p2028_p2 }
  0x2b   : > { %413 = vst [vmem:[#allocation2 + $0x80] sm:$0xff] %v2080_v33 }
  0x2c   : > { %1170 = vmatpush.bf16.msrb.mxu0 %v1863_v19  ;;  %1199 = vmatpush.bf16.msrb.mxu1 %v1871_v31  ;;  %414 = vst [vmem:[#allocation2 + $0x88] sm:$0x3] %v2080_v33  ;;  %v1902_v31 = vld [vmem:[#allocation3 + $0x1e8] sm:$0xff] }
  0x2d   : > { %1116 = vmatpush.bf16.msra.mxu2 %v1843_v37  ;;  %1919 = vmatpush.bf16.msra.mxu3 %v1843_v37  ;;  %415 = vst [vmem:[#allocation2 + $0x90] sm:$0xff] %v2080_v33 }
  0x2e   : > { %416 = vst [vmem:[#allocation2 + $0x98] sm:$0x3] %v2080_v33 }
  0x30   : > { %1171 = vmatpush.bf16.msrb.mxu0 %v1862_v27  ;;  %1200 = vmatpush.bf16.msrb.mxu1 %v1870_v36  ;;  %v1901_v36 = vld [vmem:[#allocation3 + $0x1e0] sm:$0xff] }
  0x31   : > { %1117 = vmatpush.bf16.msra.mxu2 %v1842_v40  ;;  %1920 = vmatpush.bf16.msra.mxu3 %v1842_v40 }
  0x34   : > { %1172 = vmatpush.bf16.msrb.mxu0 %v1861_v30  ;;  %1201 = vmatpush.bf16.msrb.mxu1 %v1869_v39  ;;  %v1892_v30 = vld [vmem:[#allocation3 + $0x198] sm:$0xff] }
  0x35   : > { %1118 = vmatpush.bf16.msra.mxu2 %v1841_v43  ;;  %1921 = vmatpush.bf16.msra.mxu3 %v1841_v43 }
  0x37   : > { %1532 = vmatmul.msk.bf16.gmra.mxu0 %vm299_vm1, %v1834_v11  ;;  %1536 = vmatmul.msk.bf16.gmra.mxu1 %vm299_vm1, %v1834_v11 }
  0x38   : > { %1173 = vmatpush.bf16.msrb.mxu0 %v1860_v35  ;;  %1202 = vmatpush.bf16.msrb.mxu1 %v1868_v42  ;;  %v1891_v35 = vld [vmem:[#allocation3 + $0x190] sm:$0xff] }
  0x39   : > { %1227 = vmatpush.bf16.msrb.mxu2 %v1880_v47  ;;  %1140 = vmatpush.bf16.msrb.mxu3 %v1856_v4  ;;  %v1887_v4 = vld [vmem:[#allocation3 + $0x170] sm:$0xff] }
  0x3c   : > { %1174 = vmatpush.bf16.msrb.mxu0 %v1859_v38  ;;  %1203 = vmatpush.bf16.msrb.mxu1 %v1867_v45  ;;  %v1900_v45 = vld [vmem:[#allocation3 + $0x1d8] sm:$0xff] }
  0x3d   : > { %1228 = vmatpush.bf16.msrb.mxu2 %v1879_v49  ;;  %1141 = vmatpush.bf16.msrb.mxu3 %v1855_v9  ;;  %v1889_v49 = vld [vmem:[#allocation3 + $0x180] sm:$0xff] }
  0x40   : > { %1175 = vmatpush.bf16.msrb.mxu0 %v1858_v41  ;;  %1204 = vmatpush.bf16.msrb.mxu1 %v1866_v46  ;;  %v1850_v41 = vld [vmem:[#allocation3 + $0x48] sm:$0xff] }
  0x41   : > { %1229 = vmatpush.bf16.msrb.mxu2 %v1878_v50  ;;  %1142 = vmatpush.bf16.msrb.mxu3 %v1854_v14  ;;  %v1899_v50 = vld [vmem:[#allocation3 + $0x1d0] sm:$0xff] }
  0x44   : > { %1176 = vmatpush.bf16.msrb.mxu0 %v1857_v44  ;;  %1205 = vmatpush.bf16.msrb.mxu1 %v1865_v48  ;;  %v1890_v44 = vld [vmem:[#allocation3 + $0x188] sm:$0xff]  ;;  %v1849_v48 = vld [vmem:[#allocation3 + $0x40] sm:$0xff] }
  0x45   : > { %1230 = vmatpush.bf16.msrb.mxu2 %v1877_v51  ;;  %1143 = vmatpush.bf16.msrb.mxu3 %v1853_v22 }
  0x47   : > { %1533 = vmatmul.msk.bf16.gmra.mxu0 %vm299_vm1, %v1835_v25  ;;  %1537 = vmatmul.msk.bf16.gmra.mxu1 %vm299_vm1, %v1835_v25 }
  0x48   : > { %1285 = vmatpush.bf16.msra.mxu0 %v1896_v5  ;;  %1314 = vmatpush.bf16.msra.mxu1 %v1904_v18 }
  0x49   : > { %1231 = vmatpush.bf16.msrb.mxu2 %v1876_v53  ;;  %1144 = vmatpush.bf16.msrb.mxu3 %v1852_v29  ;;  %v1907_v29 = vld [vmem:[#allocation3 + $0x210] sm:$0xff] }
  0x4c   : > { %1286 = vmatpush.bf16.msra.mxu0 %v1895_v10  ;;  %1315 = vmatpush.bf16.msra.mxu1 %v1903_v24 }
  0x4d   : > { %1232 = vmatpush.bf16.msrb.mxu2 %v1875_v56  ;;  %1145 = vmatpush.bf16.msrb.mxu3 %v1851_v34  ;;  %v1905_v34 = vld [vmem:[#allocation3 + $0x200] sm:$0xff] }
  0x50   : > { %1287 = vmatpush.bf16.msra.mxu0 %v1894_v17  ;;  %1316 = vmatpush.bf16.msra.mxu1 %v1902_v31  ;;  %v1909_v17 = vld [vmem:[#allocation3 + $0x220] sm:$0xff] }
  0x51   : > { %1233 = vmatpush.bf16.msrb.mxu2 %v1874_v58  ;;  %1146 = vmatpush.bf16.msrb.mxu3 %v1850_v41  ;;  %v1881_v41 = vld [vmem:[#allocation3 + $0x140] sm:$0xff] }
  0x54   : > { %1288 = vmatpush.bf16.msra.mxu0 %v1893_v23  ;;  %1317 = vmatpush.bf16.msra.mxu1 %v1901_v36  ;;  %v1884_v36 = vld [vmem:[#allocation3 + $0x158] sm:$0xff] }
  0x55   : > { %1234 = vmatpush.bf16.msrb.mxu2 %v1873_v62  ;;  %1147 = vmatpush.bf16.msrb.mxu3 %v1849_v48  ;;  %v1888_v62 = vld [vmem:[#allocation3 + $0x178] sm:$0xff] }
  0x57   : > { %1534 = vmatmul.msk.bf16.gmra.mxu0 %vm299_vm1, %v1836_v32  ;;  %1538 = vmatmul.msk.bf16.gmra.mxu1 %vm299_vm1, %v1836_v32 }
  0x58   : > { %1289 = vmatpush.bf16.msra.mxu0 %v1892_v30  ;;  %1318 = vmatpush.bf16.msra.mxu1 %v1900_v45  ;;  %v1885_v30 = vld [vmem:[#allocation3 + $0x160] sm:$0xff]  ;;  %v490_v45 = vld [vmem:[#allocation2 + $0x91] sm:$0xff] }
  0x5c   : > { %1290 = vmatpush.bf16.msra.mxu0 %v1891_v35  ;;  %1319 = vmatpush.bf16.msra.mxu1 %v1899_v50  ;;  %v434_v35 = vld [vmem:[#allocation2 + $0x1] sm:$0xff]  ;;  %v498_v50 = vld [vmem:[#allocation2 + $0x92] sm:$0xff] }
  0x60   : > { %1291 = vmatpush.bf16.msra.mxu0 %v1890_v44 }
  0x64   : > { %1292 = vmatpush.bf16.msra.mxu0 %v1889_v49 }
  0xa4   : > { %v328_v54 = vpop.f32.mrf.mxu0 }
  0xa5   : > { %v381_v55 = vadd.f32 %v2242_v52, %v328_v54 }
  0xa7   : > { %v2245_v57 = vmax.f32 %v381_v55, 0.0 }
  0xa9   : > { %418 = vst [vmem:[#allocation2 + $0x11] sm:$0xff] %v2245_v57 }
  0xac   : > { %v330_v59 = vpop.f32.mrf.mxu0 }
  0xad   : > { %v382_v60 = vadd.f32 %v2242_v52, %v330_v59  ;;  %v1898_v59 = vld [vmem:[#allocation3 + $0x1c8] sm:$0xff] }
  0xae   : > { %1320 = vmatpush.bf16.msra.mxu1 %v1898_v59 }
  0xaf   : > { %v2249_v63 = vmax.f32 %v382_v60, 0.0  ;;  %v1912_v60 = vld [vmem:[#allocation3 + $0x238] sm:$0xff] }
  0xb0   : > { %v427_v0 = vld [vmem:[#allocation2 + $0x10] sm:$0xff] }
  0xb1   : > { %v2251_v1 = vld [vmem:[#allocation2 + $0x12] sm:$0xff]  ;;  %419 = vst [vmem:[#allocation2 + $0x21] sm:$0xff] %v2249_v63  ;;  %v499_v2 = vpack.c.bf16 %v427_v0, %v2080_v33  ;;  %v503_v58 = vpack.c.bf16 %v2249_v63, %v2245_v57 }
  0xb2   : > { %v501_v3 = vpack.c.bf16 %v2251_v1, %v442_v61 }
  0xb3   : > { %1119 = vmatmul.bf16.vlgmr.msra.gmra.mxu2 %v499_v2  ;;  %v1911_v2 = vld [vmem:[#allocation3 + $0x230] sm:$0xff] }
  0xb4   : > { %1177 = vmatmul.bf16.vlgmr.msrb.gmra.mxu0 %v501_v3  ;;  %v333_v6 = vpop.f32.mrf.mxu0  ;;  %1343 = vmatpush.bf16.msra.mxu2 %v1912_v60  ;;  %v1897_v3 = vld [vmem:[#allocation3 + $0x1c0] sm:$0xff] }
  0xb5   : > { %v383_v7 = vadd.f32 %v2242_v52, %v333_v6  ;;  %1321 = vmatpush.bf16.msra.mxu1 %v1897_v3 }
  0xb7   : > { %v2257_v8 = vmax.f32 %v383_v7, 0.0 }
  0xb8   : > { %v451_v11 = vld [vmem:[#allocation2 + $0x20] sm:$0xff]  ;;  %1344 = vmatpush.bf16.msra.mxu2 %v1911_v2 }
  0xb9   : > { %v2259_v12 = vld [vmem:[#allocation2 + $0x22] sm:$0xff]  ;;  %420 = vst [vmem:[#allocation2 + $0x31] sm:$0xff] %v2257_v8  ;;  %v502_v13 = vpack.c.bf16 %v451_v11, %v427_v0  ;;  %v2264_v15 = vpack.c.bf16 %v2257_v8, %v2249_v63 }
  0xba   : > { %v504_v16 = vpack.c.bf16 %v2259_v12, %v2251_v1 }
  0xbb   : > { %1206 = vmatmul.bf16.vlgmr.msrb.gmra.mxu1 %v502_v13 }
  0xbc   : > { %v335_v19 = vpop.f32.mrf.mxu0 }
  0xbd   : > { %v384_v20 = vadd.f32 %v2242_v52, %v335_v19 }
  0xbf   : > { %v2269_v21 = vmax.f32 %v384_v20, 0.0 }
  0xc0   : > { %v429_v25 = vld [vmem:[#allocation2 + $0x30] sm:$0xff] }
  0xc1   : > { %v2271_v26 = vld [vmem:[#allocation2 + $0x32] sm:$0xff]  ;;  %421 = vst [vmem:[#allocation2 + $0x41] sm:$0xff] %v2269_v21  ;;  %v2274_v27 = vpack.c.bf16 %v429_v25, %v451_v11  ;;  %v1910_v11 = vld [vmem:[#allocation3 + $0x228] sm:$0xff]  ;;  %v512_v24 = vpack.c.bf16 %v2269_v21, %v2257_v8  ;;  %v500_v8 = vpack.c.bf16 %v2245_v57, %v434_v35 }
  0xc2   : > { %v2278_v28 = vpack.c.bf16 %v2271_v26, %v2259_v12  ;;  %1345 = vmatpush.bf16.msra.mxu2 %v1910_v11  ;;  %v1882_v57 = vld [vmem:[#allocation3 + $0x148] sm:$0xff] }
  0xc3   : > { %1124 = vmatmul.bf16.gmra.mxu2 %v2274_v27 }
  0xc4   : > { %1182 = vmatmul.bf16.gmra.mxu0 %v2278_v28  ;;  %v338_v32 = vpop.f32.mrf.mxu0 }
  0xc5   : > { %v385_v33 = vadd.f32 %v2242_v52, %v338_v32 }
  0xc6   : > { %1346 = vmatpush.bf16.msra.mxu2 %v1909_v17 }
  0xc7   : > { %v2283_v37 = vmax.f32 %v385_v33, 0.0  ;;  %v1906_v33 = vld [vmem:[#allocation3 + $0x208] sm:$0xff] }
  0xc8   : > { %v453_v38 = vld [vmem:[#allocation2 + $0x40] sm:$0xff] }
  0xc9   : > { %v2285_v39 = vld [vmem:[#allocation2 + $0x42] sm:$0xff]  ;;  %422 = vst [vmem:[#allocation2 + $0x51] sm:$0xff] %v2283_v37  ;;  %v511_v40 = vpack.c.bf16 %v453_v38, %v429_v25  ;;  %v2290_v42 = vpack.c.bf16 %v2283_v37, %v2269_v21  ;;  %v1908_v25 = vld [vmem:[#allocation3 + $0x218] sm:$0xff] }
  0xca   : > { %v513_v43 = vpack.c.bf16 %v2285_v39, %v2271_v26  ;;  %1347 = vmatpush.bf16.msra.mxu2 %v1908_v25 }
  0xcb   : > { %1211 = vmatmul.bf16.gmra.mxu1 %v511_v40 }
  0xcc   : > { %v340_v46 = vpop.f32.mrf.mxu0 }
  0xcd   : > { %v386_v47 = vadd.f32 %v2242_v52, %v340_v46 }
  0xce   : > { %1348 = vmatpush.bf16.msra.mxu2 %v1907_v29 }
  0xcf   : > { %v2295_v51 = vmax.f32 %v386_v47, 0.0 }
  0xd0   : > { %v431_v53 = vld [vmem:[#allocation2 + $0x50] sm:$0xff] }
  0xd1   : > { %v2297_v54 = vld [vmem:[#allocation2 + $0x52] sm:$0xff]  ;;  %423 = vst [vmem:[#allocation2 + $0x61] sm:$0xff] %v2295_v51  ;;  %v2300_v55 = vpack.c.bf16 %v431_v53, %v453_v38  ;;  %v521_v21 = vpack.c.bf16 %v2295_v51, %v2283_v37 }
  0xd2   : > { %v2304_v56 = vpack.c.bf16 %v2297_v54, %v2285_v39  ;;  %1349 = vmatpush.bf16.msra.mxu2 %v1906_v33  ;;  %v1883_v38 = vld [vmem:[#allocation3 + $0x150] sm:$0xff] }
  0xd3   : > { %1129 = vmatmul.bf16.vlgmr.msra.gmra.mxu3 %v2300_v55  ;;  %1235 = vmatmul.bf16.vlgmr.msrb.gmra.mxu2 %v503_v58 }
  0xd4   : > { %1187 = vmatmul.bf16.gmra.mxu0 %v2304_v56  ;;  %v343_v61 = vpop.f32.mrf.mxu0  ;;  %1256 = vmatpush.bf16.msra.mxu3 %v1888_v62 }
  0xd5   : > { %v387_v0 = vadd.f32 %v2242_v52, %v343_v61 }
  0xd6   : > { %1350 = vmatpush.bf16.msra.mxu2 %v1905_v34 }
  0xd7   : > { %v395_v5 = vmax.f32 %v387_v0, 0.0 }
  0xd8   : > { %v455_v63 = vld [vmem:[#allocation2 + $0x60] sm:$0xff]  ;;  %1257 = vmatpush.bf16.msra.mxu3 %v1887_v4 }
  0xd9   : > { %v2311_v6 = vld [vmem:[#allocation2 + $0x62] sm:$0xff]  ;;  %424 = vst [vmem:[#allocation2 + $0x71] sm:$0xff] %v395_v5  ;;  %v520_v7 = vpack.c.bf16 %v455_v63, %v431_v53  ;;  %v2314_v9 = vpack.c.bf16 %v395_v5, %v2295_v51 }
  0xda   : > { %v522_v10 = vpack.c.bf16 %v2311_v6, %v2297_v54 }
  0xdb   : > { %1216 = vmatmul.bf16.gmra.mxu1 %v520_v7 }
  0xdc   : > { %v345_v13 = vpop.f32.mrf.mxu0 }
  0xdd   : > { %v388_v14 = vadd.f32 %v2242_v52, %v345_v13  ;;  %v1886_v52 = vld [vmem:[#allocation3 + $0x168] sm:$0xff] }
  0xde   : > { %1258 = vmatpush.bf16.msra.mxu3 %v1886_v52 }
  0xdf   : > { %v396_v18 = vmax.f32 %v388_v14, 0.0 }
  0xe0   : > { %v433_v19 = vld [vmem:[#allocation2 + $0x70] sm:$0xff] }
  0xe1   : > { %v2319_v20 = vld [vmem:[#allocation2 + $0x72] sm:$0xff]  ;;  %425 = vst [vmem:[#allocation2 + $0x81] sm:$0xff] %v396_v18  ;;  %v526_v22 = vpack.c.bf16 %v433_v19, %v455_v63  ;;  %v530_v40 = vpack.c.bf16 %v396_v18, %v395_v5  ;;  %v533_v46 = vpack.c.bf16 %v490_v45, %v396_v18 }
  0xe2   : > { %v528_v23 = vpack.c.bf16 %v2319_v20, %v2311_v6  ;;  %1259 = vmatpush.bf16.msra.mxu3 %v1885_v30 }
  0xe3   : > { %1134 = vmatmul.bf16.gmra.mxu3 %v526_v22  ;;  %1240 = vmatmul.bf16.gmra.mxu2 %v512_v24 }
  0xe4   : > { %1192 = vmatmul.bf16.gmra.mxu0 %v528_v23 }
  0xe6   : > { %1260 = vmatpush.bf16.msra.mxu3 %v1884_v36 }
  0xe8   : > { %v457_v31 = vld [vmem:[#allocation2 + $0x80] sm:$0xff] }
  0xe9   : > { %v529_v32 = vpack.c.bf16 %v457_v31, %v433_v19  ;;  %v532_v44 = vpack.c.bf16 0.0, %v457_v31  ;;  %v497_v49 = vld [vmem:[#allocation2 + $0x82] sm:$0xff] }
  0xea   : > { %1261 = vmatpush.bf16.msra.mxu3 %v1883_v38  ;;  %v534_v53 = vpack.c.bf16 %v498_v50, %v497_v49  ;;  %v531_v26 = vpack.c.bf16 %v497_v49, %v2319_v20 }
  0xeb   : > { %1221 = vmatmul.bf16.gmra.mxu1 %v529_v32 }
  0xee   : > { %1262 = vmatpush.bf16.msra.mxu3 %v1882_v57 }
  0xf2   : > { %1263 = vmatpush.bf16.msra.mxu3 %v1881_v41 }
  0xf3   : > { %1148 = vmatmul.bf16.vlgmr.msrb.gmra.mxu3 %v500_v8  ;;  %1245 = vmatmul.bf16.gmra.mxu2 %v521_v21 }
  0xf4   : > { %1293 = vmatmul.bf16.vlgmr.msra.gmra.mxu0 %v2274_v27  ;;  %v2333_v27 = vpop.f32.mrf.mxu1 }
  0xfb   : > { %1322 = vmatmul.bf16.vlgmr.msra.gmra.mxu1 %v2264_v15 }
  0xfc   : > { %v2337_v37 = vpop.f32.mrf.mxu1 }
 0x103   : > { %1153 = vmatmul.bf16.gmra.mxu3 %v2264_v15  ;;  %1250 = vmatmul.bf16.gmra.mxu2 %v530_v40 }
 0x104   : > { %1298 = vmatmul.bf16.gmra.mxu0 %v2300_v55  ;;  %v2340_v15 = vpop.f32.mrf.mxu1 }
 0x10b   : > { %1327 = vmatmul.bf16.gmra.mxu1 %v2290_v42 }
 0x10c   : > { %v2344_v47 = vpop.f32.mrf.mxu1 }
 0x113   : > { %1158 = vmatmul.bf16.gmra.mxu3 %v2290_v42  ;;  %1351 = vmatmul.bf16.vlgmr.msra.gmra.mxu2 %v2278_v28 }
 0x114   : > { %1303 = vmatmul.bf16.gmra.mxu0 %v526_v22  ;;  %v2349_v28 = vpop.f32.mrf.mxu1 }
 0x11b   : > { %1332 = vmatmul.bf16.gmra.mxu1 %v2314_v9 }
 0x11c   : > { %v2351_v48 = vpop.f32.mrf.mxu1 }
 0x123   : > { %1163 = vmatmul.bf16.gmra.mxu3 %v2314_v9  ;;  %1356 = vmatmul.bf16.gmra.mxu2 %v2304_v56 }
 0x124   : > { %1308 = vmatmul.bf16.gmra.mxu0 %v532_v44  ;;  %v2356_v55 = vpop.f32.mrf.mxu1 }
 0x12b   : > { %1337 = vmatmul.bf16.gmra.mxu1 %v533_v46 }
 0x12c   : > { %v374_v1 = vpop.f32.mrf.mxu1 }
 0x131   : > { %v1178_v58 = vpop.f32.mrf.mxu0 }
 0x133   : > { %1264 = vmatmul.bf16.vlgmr.msra.gmra.mxu3 %v504_v16  ;;  %1361 = vmatmul.bf16.gmra.mxu2 %v528_v23 }
 0x136   : > { %v1120_v42 = vpop.f32.mrf.mxu2 }
 0x137   : > { %v1121_v34 = vadd.f32 %v1120_v42, %v2333_v27 }
 0x138   : > { %v1207_v59 = vpop.f32.mrf.mxu1 }
 0x139   : > { %v1180_v39 = vpop.f32.mrf.mxu0 }
 0x13e   : > { %v1122_v51 = vpop.f32.mrf.mxu2 }
 0x13f   : > { %v1123_v57 = vadd.f32 %v1122_v51, %v2337_v37  ;;  %v2417_v37 = vld [vmem:[%s2505_s4] ss:$0 sm:$0xff] }
 0x141   : > { %v1183_v2 = vpop.f32.mrf.mxu0 }
 0x143   : > { %1269 = vmatmul.bf16.gmra.mxu3 %v513_v43  ;;  %1366 = vmatmul.bf16.gmra.mxu2 %v534_v53  ;;  %v1209_v43 = vpop.f32.mrf.mxu1 }
 0x146   : > { %v1125_v56 = vpop.f32.mrf.mxu2 }
 0x147   : > { %v1126_v27 = vadd.f32 %v1125_v56, %v2340_v15 }
 0x149   : > { %v2374_v6 = vpop.f32.mrf.mxu0 }
 0x14b   : > { %v1212_v4 = vpop.f32.mrf.mxu1 }
 0x14e   : > { %v2361_v12 = vpop.f32.mrf.mxu2 }
 0x14f   : > { %v1128_v15 = vadd.f32 %v2361_v12, %v2344_v47 }
 0x151   : > { %v2380_v11 = vpop.f32.mrf.mxu0 }
 0x153   : > { %1274 = vmatmul.bf16.gmra.mxu3 %v522_v10  ;;  %v2376_v7 = vpop.f32.mrf.mxu1 }
 0x156   : > { %v2363_v16 = vpop.f32.mrf.mxu3  ;;  %v1236_v60 = vpop.f32.mrf.mxu2 }
 0x159   : > { %v2386_v18 = vpop.f32.mrf.mxu0 }
 0x15b   : > { %v2382_v13 = vpop.f32.mrf.mxu1 }
 0x15e   : > { %v2365_v61 = vpop.f32.mrf.mxu3  ;;  %v1238_v0 = vpop.f32.mrf.mxu2 }
 0x161   : > { %v2392_v23 = vpop.f32.mrf.mxu0 }
 0x163   : > { %1279 = vmatmul.bf16.gmra.mxu3 %v531_v26  ;;  %v2388_v19 = vpop.f32.mrf.mxu1 }
 0x166   : > { %v2368_v62 = vpop.f32.mrf.mxu3  ;;  %v2372_v5 = vpop.f32.mrf.mxu2 }
 0x169   : > { %v2400_v30 = vpop.f32.mrf.mxu0 }
 0x16b   : > { %v2394_v25 = vpop.f32.mrf.mxu1 }
 0x16e   : > { %v1137_v54 = vpop.f32.mrf.mxu3  ;;  %v2378_v9 = vpop.f32.mrf.mxu2 }
 0x16f   : > { %v2370_v3 = vadd.f32 %v1137_v54, %v374_v1 }
 0x171   : > { %v1294_v8 = vpop.f32.mrf.mxu0 }
 0x173   : > { %v2402_v31 = vpop.f32.mrf.mxu1 }
 0x176   : > { %v1149_v63 = vpop.f32.mrf.mxu3  ;;  %v2384_v14 = vpop.f32.mrf.mxu2 }
 0x177   : > { %v1150_v35 = vadd.f32 %v1149_v63, %v1121_v34 }
 0x179   : > { %v1179_v36 = vadd.f32 %v1178_v58, %v1150_v35  ;;  %v1296_v45 = vpop.f32.mrf.mxu0 }
 0x17b   : > { %v1323_v21 = vpop.f32.mrf.mxu1  ;;  %v1208_v44 = vadd.f32 %v1207_v59, %v1179_v36 }
 0x17d   : > { %v1237_v49 = vadd.f32 %v1236_v60, %v1208_v44 }
 0x17e   : > { %v1151_v10 = vpop.f32.mrf.mxu3  ;;  %v2390_v22 = vpop.f32.mrf.mxu2 }
 0x17f   : > { %v1152_v41 = vadd.f32 %v1151_v10, %v1123_v57  ;;  %v1131_v57 = vadd.f32 %v2363_v16, %v2349_v28  ;;  %v1133_v16 = vadd.f32 %v2365_v61, %v2351_v48 }
 0x181   : > { %v1181_v46 = vadd.f32 %v1180_v39, %v1152_v41  ;;  %v1299_v39 = vpop.f32.mrf.mxu0 }
 0x183   : > { %v1325_v50 = vpop.f32.mrf.mxu1  ;;  %v1210_v54 = vadd.f32 %v1209_v43, %v1181_v46 }
 0x185   : > { %v1239_v60 = vadd.f32 %v1238_v0, %v1210_v54 }
 0x186   : > { %v1154_v17 = vpop.f32.mrf.mxu3  ;;  %v2396_v52 = vpop.f32.mrf.mxu2 }
 0x187   : > { %v1155_v26 = vadd.f32 %v1154_v17, %v1126_v27 }
 0x189   : > { %v1184_v51 = vadd.f32 %v1183_v2, %v1155_v26 }
 0x18b   : > { %v1328_v17 = vpop.f32.mrf.mxu1 }
 0x18e   : > { %v1156_v20 = vpop.f32.mrf.mxu3  ;;  %v2404_v32 = vpop.f32.mrf.mxu2 }
 0x18f   : > { %v1157_v34 = vadd.f32 %v1156_v20, %v1128_v15 }
 0x191   : > { %v1186_v2 = vadd.f32 %v2374_v6, %v1157_v34 }
 0x196   : > { %v1159_v24 = vpop.f32.mrf.mxu3  ;;  %v1352_v38 = vpop.f32.mrf.mxu2 }
 0x197   : > { %v1160_v44 = vadd.f32 %v1159_v24, %v1131_v57 }
 0x19e   : > { %v2398_v29 = vpop.f32.mrf.mxu3  ;;  %v1354_v1 = vpop.f32.mrf.mxu2 }
 0x19f   : > { %v1162_v26 = vadd.f32 %v2398_v29, %v1133_v16 }
 0x1a6   : > { %v2406_v33 = vpop.f32.mrf.mxu3  ;;  %v1357_v36 = vpop.f32.mrf.mxu2 }
 0x1ae   : > { %v2409_v40 = vpop.f32.mrf.mxu3 }
 0x1b6   : > { %v1265_v53 = vpop.f32.mrf.mxu3 }
 0x1b7   : > { %v1266_v42 = vadd.f32 %v1265_v53, %v1237_v49  ;;  %v1215_v49 = vadd.f32 %v2376_v7, %v1186_v2  ;;  %v1330_v53 = vpop.f32.mrf.mxu1 }
 0x1b9   : > { %v1295_v58 = vadd.f32 %v1294_v8, %v1266_v42  ;;  %v1244_v42 = vadd.f32 %v2378_v9, %v1215_v49  ;;  %v1191_v9 = vadd.f32 %v2386_v18, %v1162_v26 }
 0x1bb   : > { %v1324_v63 = vadd.f32 %v1323_v21, %v1295_v58  ;;  %v1213_v21 = vadd.f32 %v1212_v4, %v1184_v51  ;;  %v1301_v4 = vpop.f32.mrf.mxu0 }
 0x1bd   : > { %v1353_v59 = vadd.f32 %v1352_v38, %v1324_v63  ;;  %v1242_v47 = vadd.f32 %v2372_v5, %v1213_v21  ;;  %v1189_v5 = vadd.f32 %v2380_v11, %v1160_v44 }
 0x1be   : > { %v1267_v10 = vpop.f32.mrf.mxu3 }
 0x1bf   : > { %v1376_v56 = vadd.f32 %v2417_v37, %v1353_v59  ;;  %v1268_v43 = vadd.f32 %v1267_v10, %v1239_v60  ;;  %v1218_v54 = vadd.f32 %v2382_v13, %v1189_v5  ;;  %v1333_v51 = vpop.f32.mrf.mxu1 }
 0x1c1   : > { %v1384_v35 = vmax.f32 %v1376_v56, 0.0  ;;  %v1297_v8 = vadd.f32 %v1296_v45, %v1268_v43  ;;  %v1247_v60 = vadd.f32 %v2384_v14, %v1218_v54  ;;  %v1220_v43 = vadd.f32 %v2388_v19, %v1191_v9 }
 0x1c3   : > { %1392 = vst [vmem:[%s2424_s9] sm:$0xff] %v1384_v35  ;;  %v1326_v0 = vadd.f32 %v1325_v50, %v1297_v8  ;;  %v1359_v50 = vpop.f32.mrf.mxu2  ;;  %v1304_v63 = vpop.f32.mrf.mxu0  ;;  %v1249_v35 = vadd.f32 %v2390_v22, %v1220_v43 }
 0x1c5   : > { %v1355_v38 = vadd.f32 %v1354_v1, %v1326_v0 }
 0x1c6   : > { %v1270_v12 = vpop.f32.mrf.mxu3 }
 0x1c7   : > { %v1377_v20 = vadd.f32 %v2417_v37, %v1355_v38  ;;  %v1271_v41 = vadd.f32 %v1270_v12, %v1242_v47  ;;  %v1335_v8 = vpop.f32.mrf.mxu1 }
 0x1c9   : > { %v1385_v45 = vmax.f32 %v1377_v20, 0.0  ;;  %v1300_v46 = vadd.f32 %v1299_v39, %v1271_v41  ;;  %v1136_v39 = vadd.f32 %v2368_v62, %v2356_v55 }
 0x1cb   : > { %1393 = vst [vmem:[%s2424_s9 + $0x8] sm:$0xff] %v1385_v45  ;;  %v1329_v6 = vadd.f32 %v1328_v17, %v1300_v46  ;;  %v1362_v48 = vpop.f32.mrf.mxu2  ;;  %v1165_v13 = vadd.f32 %v2406_v33, %v1136_v39  ;;  %v1306_v17 = vpop.f32.mrf.mxu0  ;;  %v1167_v33 = vadd.f32 %v2409_v40, %v2370_v3 }
 0x1cd   : > { %v1358_v27 = vadd.f32 %v1357_v36, %v1329_v6  ;;  %v1194_v14 = vadd.f32 %v2392_v23, %v1165_v13  ;;  %v1196_v23 = vadd.f32 %v2400_v30, %v1167_v33 }
 0x1ce   : > { %v1272_v28 = vpop.f32.mrf.mxu3 }
 0x1cf   : > { %v1378_v24 = vadd.f32 %v2417_v37, %v1358_v27  ;;  %v1273_v1 = vadd.f32 %v1272_v28, %v1244_v42  ;;  %v1223_v2 = vadd.f32 %v2394_v25, %v1194_v14  ;;  %v1225_v44 = vadd.f32 %v2402_v31, %v1196_v23 }
 0x1d1   : > { %v1386_v7 = vmax.f32 %v1378_v24, 0.0  ;;  %v1302_v58 = vadd.f32 %v1301_v4, %v1273_v1  ;;  %v1252_v22 = vadd.f32 %v2396_v52, %v1223_v2  ;;  %v1338_v4 = vpop.f32.mrf.mxu1  ;;  %v1254_v46 = vadd.f32 %v2404_v32, %v1225_v44 }
 0x1d3   : > { %1394 = vst [vmem:[%s2424_s9 + $0x10] sm:$0xff] %v1386_v7  ;;  %v1331_v11 = vadd.f32 %v1330_v53, %v1302_v58  ;;  %v1364_v36 = vpop.f32.mrf.mxu2  ;;  %v1309_v12 = vpop.f32.mrf.mxu0 }
 0x1d5   : > { %v1360_v59 = vadd.f32 %v1359_v50, %v1331_v11 }
 0x1d6   : > { %v1275_v61 = vpop.f32.mrf.mxu3 }
 0x1d7   : > { %v1379_v29 = vadd.f32 %v2417_v37, %v1360_v59  ;;  %v1276_v10 = vadd.f32 %v1275_v61, %v1247_v60 }
 0x1d9   : > { %v1387_v15 = vmax.f32 %v1379_v29, 0.0  ;;  %v1305_v56 = vadd.f32 %v1304_v63, %v1276_v10  ;;  %v1340_v27 = vpop.f32.mrf.mxu1 }
 0x1db   : > { %1395 = vst [vmem:[%s2424_s9 + $0x18] sm:$0xff] %v1387_v15  ;;  %v1334_v18 = vadd.f32 %v1333_v51, %v1305_v56  ;;  %v1367_v25 = vpop.f32.mrf.mxu2  ;;  %v1311_v6 = vpop.f32.mrf.mxu0 }
 0x1dd   : > { %v1363_v34 = vadd.f32 %v1362_v48, %v1334_v18 }
 0x1de   : > { %v1277_v55 = vpop.f32.mrf.mxu3 }
 0x1df   : > { %v1380_v62 = vadd.f32 %v2417_v37, %v1363_v34  ;;  %v1278_v21 = vadd.f32 %v1277_v55, %v1249_v35 }
 0x1e1   : > { %v1388_v0 = vmax.f32 %v1380_v62, 0.0  ;;  %v1307_v19 = vadd.f32 %v1306_v17, %v1278_v21 }
 0x1e3   : > { %1396 = vst [vmem:[%s2424_s9 + $0x20] sm:$0xff] %v1388_v0  ;;  %v1336_v38 = vadd.f32 %v1335_v8, %v1307_v19  ;;  %v1369_v42 = vpop.f32.mrf.mxu2 }
 0x1e5   : > { %v1365_v47 = vadd.f32 %v1364_v36, %v1336_v38 }
 0x1e6   : > { %v1280_v57 = vpop.f32.mrf.mxu3 }
 0x1e7   : > { %v1381_v20 = vadd.f32 %v2417_v37, %v1365_v47  ;;  %v1281_v41 = vadd.f32 %v1280_v57, %v1252_v22 }
 0x1e9   : > { %v1389_v3 = vmax.f32 %v1381_v20, 0.0  ;;  %v1310_v40 = vadd.f32 %v1309_v12, %v1281_v41 }
 0x1eb   : > { %1397 = vst [vmem:[%s2424_s9 + $0x28] sm:$0xff] %v1389_v3  ;;  %v1339_v45 = vadd.f32 %v1338_v4, %v1310_v40 }
 0x1ed   : > { %v1368_v30 = vadd.f32 %v1367_v25, %v1339_v45 }
 0x1ee   : > { %v1282_v52 = vpop.f32.mrf.mxu3 }
 0x1ef   : > { %v1382_v49 = vadd.f32 %v2417_v37, %v1368_v30  ;;  %v1283_v53 = vadd.f32 %v1282_v52, %v1254_v46 }
 0x1f1   : > { %v1390_v50 = vmax.f32 %v1382_v49, 0.0  ;;  %v1312_v5 = vadd.f32 %v1311_v6, %v1283_v53 }
 0x1f3   : > { %1398 = vst [vmem:[%s2424_s9 + $0x30] sm:$0xff] %v1390_v50  ;;  %v1341_v31 = vadd.f32 %v1340_v27, %v1312_v5 }
 0x1f5   : > { %v1370_v32 = vadd.f32 %v1369_v42, %v1341_v31 }
 0x1f7   : > { %v1383_v28 = vadd.f32 %v2417_v37, %v1370_v32 }
 0x1f9   : > { %v1391_v16 = vmax.f32 %v1383_v28, 0.0 }
 0x1fb   : > { %1399 = vst [vmem:[%s2424_s9 + $0x38] sm:$0xff] %v1391_v16 }
 0x1fc   : > { %2036 = shalt.err (!%p2033_p8)
}
 0x1fd   : > { %s2081_s30 = smov 128   ;;  %s2082_s8 = smov 8  }
 0x1fe   : > { %1926 = dma.vmem_to_hbm [thread:$0]  (%p2151_p5), %s1414_s14, 1024, %s1416_s15, %s1401_s22, %s2081_s30, %s2081_s30, %s2082_s8  }
 0x1ff PF: > { %p1938_p9 = scmp.ge.s32.totalorder %s2075_s21, 2  ;;  %s1430_s9 = sand.u32 1, %s2063_s18  }
 0x200   : > { %s1431_s10 = scalar_lea.sflag [#allocation5], %s1430_s9 }
 0x201   : > { %p1933_p10 = pnand %p1938_p9, %p2155_p6 }
 0x203   : > { %p1934_p11 = pneg %p1933_p10 }
 0x205   : > { %2058 = dma.done.wait (%p1934_p11), %s1431_s10, 1024  }
 0x206   : > { %2060 = vsyncadd (%p1934_p11), %s1431_s10, 4294966272  ;;  %p16_p12 = scmp.ge.s32.totalorder %s2138_s24, 4   ;;  %s2509_s18 = smov %s2067_s19 }
 0x207   : > { %s2510_s19 = smov %s2071_s20  ;;  %s2511_s20 = smov %s2149_s27 }
 0x208   : > { %s2512_s21 = smov %s2138_s24  ;;  %18 = sbr.rel (!%p16_p12) target bundleno = 4 (0x4), region = 82 }
 0x20d   :  { %1437 = vsyncpa [#allocation4], 1 }
 0x20e   :  { %1439 = vsyncpa [#allocation4 + $0x1], 1 }
 0x20f   :  { %1440 = vsyncpa [#allocation5], 1 }
 0x210   :  { %1442 = vsyncpa [#allocation5 + $0x1], 1 }

</bundles_post_ra>
